<compile_context>
chip_gen: v6e
topology: v6e:2x2x1
jax: 0.10.0
libtpu: 0.0.40
codegen_flags: <defaults>
</compile_context>

<pallas_src>
import functools

import jax
import jax.numpy as jnp
import numpy as np
from jax.experimental import pallas as pl
from jax.experimental.pallas import tpu as pltpu  # noqa: F401


# ----------------------------------------------------------------------------
# Fused kernel: 2 LSTM layers + time recurrence + Linear(H, 1) head.
# ----------------------------------------------------------------------------
def _fused_lstm_kernel(x_ref, wih1_ref, b1_ref, w1c_ref, whh2_ref, b2_ref,
                       wfc_ref, bfc_ref, out_ref,
                       *, seq_len, batch, hidden):
    H = hidden
    H4 = 4 * H

    # ---- hoisted gate-band constants (built ONCE; JAX does not CSE iota /
    #      broadcast_in_dim, so these must not live inside cell()).
    lane = jax.lax.broadcasted_iota(jnp.int32, (batch, H4), 1)
    g_band = (lane >= 2 * H) & (lane < 3 * H)
    # sigmoid(x) = 0.5*tanh(0.5*x) + 0.5  on i/f/o bands; tanh(x) on g band.
    scale = jnp.where(g_band, 1.0, 0.5).astype(jnp.float32)
    offset = jnp.where(g_band, 0.0, 0.5).astype(jnp.float32)

    def cell(gates, c_prev):
        # Single EUP tanh over the whole (B, 4H) vreg; sigmoid bands recovered
        # with hoisted scale/offset (pure VPU fixups, no second transcendental).
        act = jnp.tanh(gates * scale) * scale + offset
        i_g = act[:, 0 * H:1 * H]
        f_g = act[:, 1 * H:2 * H]
        g_g = act[:, 2 * H:3 * H]
        o_g = act[:, 3 * H:4 * H]
        c_new = f_g * c_prev + i_g * g_g
        h_new = o_g * jnp.tanh(c_new)
        return h_new, c_new

    # ---- hoisted layer-1 input projection for every timestep: one MXU call.
    #      (T*B, D)bf16 @ (D, 4H)bf16 -> f32, + b1.
    xproj = (jnp.dot(x_ref[...], wih1_ref[...],
                     preferred_element_type=jnp.float32) + b1_ref[...])

    w1c = w1c_ref[...]     # (H, 8H) = [W_hh1^T | W_ih2^T], bf16
    whh2 = whh2_ref[...]   # (H, 4H), bf16
    b2 = b2_ref[...]       # (1, 4H), f32

    zeros = jnp.zeros((batch, H), jnp.float32)
    c1, c2, h2 = zeros, zeros, zeros
    rec1 = jnp.zeros((batch, H4), jnp.float32)   # carries h1_{t-1} @ W_hh1^T

    # ---- fully unrolled recurrence: state in vregs, no per-step DMA.
    for t in range(seq_len):
        # layer 1: gates = (x-projection) + (recurrent term carried from t-1).
        xp_t = xproj[t * batch:(t + 1) * batch, :]
        g1 = xp_t if t == 0 else xp_t + rec1
        h1, c1 = cell(g1, c1)

        # fused 256-lane MXU push: hp = h1 @ [W_hh1^T | W_ih2^T]
        #   hp[:, :4H] -> layer-1 recurrent term for step t+1
        #   hp[:, 4H:] -> layer-2 input term for step t
        hp = jnp.dot(h1.astype(jnp.bfloat16), w1c,
                     preferred_element_type=jnp.float32)
        rec1 = hp[:, :H4]

        # layer 2 (inter-layer dropout is train-time only -> identity).
        in2 = hp[:, H4:] + b2
        g2 = in2 if t == 0 else in2 + jnp.dot(
            h2.astype(jnp.bfloat16), whh2, preferred_element_type=jnp.float32)
        h2, c2 = cell(g2, c2)

    # ---- fused FC head: Linear(H, 1) as a VPU multiply + lane reduction
    #      (runs once, off the per-step chain; no N=1 MXU matmul).
    out_ref[...] = (jnp.sum(h2 * wfc_ref[...], axis=-1, keepdims=True)
                    + bfc_ref[...])


# ----------------------------------------------------------------------------
# Wrapper: weight prep (transpose / concat / bf16 cast) + one pallas_call.
# ----------------------------------------------------------------------------
def lstm_model_forward(x_btd, params):
    """x_btd: (B, T, input_size), PyTorch batch_first convention. -> (B, 1)."""
    x_btd = jnp.asarray(x_btd, jnp.float32)
    B, T, D = x_btd.shape
    layers = params["lstm"]
    assert len(layers) == 2, "kernel is specialized for num_layers=2"
    H = layers[0]["w_hh"].shape[1]

    # (B, T, D) -> (T, B, D) -> (T*B, D): flat operand for the hoisted
    # layer-1 input projection.  bf16 operands: explicit single-pass MXU.
    x_flat = jnp.transpose(x_btd, (1, 0, 2)).reshape(T * B, D)
    x_flat = x_flat.astype(jnp.bfloat16)

    l1, l2 = layers
    wih1 = jnp.asarray(l1["w_ih"], jnp.float32).T.astype(jnp.bfloat16)  # (D, 4H)
    whh1 = jnp.asarray(l1["w_hh"], jnp.float32).T                       # (H, 4H)
    wih2 = jnp.asarray(l2["w_ih"], jnp.float32).T                       # (H, 4H)
    # Fused RHS for the per-step h1 matmul: [W_hh1^T | W_ih2^T] -> (H, 8H).
    w1c = jnp.concatenate([whh1, wih2], axis=1).astype(jnp.bfloat16)
    whh2 = jnp.asarray(l2["w_hh"], jnp.float32).T.astype(jnp.bfloat16)  # (H, 4H)
    b1 = (jnp.asarray(l1["b_ih"], jnp.float32)
          + jnp.asarray(l1["b_hh"], jnp.float32)).reshape(1, 4 * H)
    b2 = (jnp.asarray(l2["b_ih"], jnp.float32)
          + jnp.asarray(l2["b_hh"], jnp.float32)).reshape(1, 4 * H)
    wfc = jnp.asarray(params["fc_w"], jnp.float32)                      # (1, H)
    bfc = jnp.asarray(params["fc_b"], jnp.float32).reshape(1, 1)        # (1, 1)

    kernel = functools.partial(_fused_lstm_kernel,
                               seq_len=T, batch=B, hidden=H)

    def _full(a):
        # whole-array VMEM-resident block (block dims == array dims).
        return pl.BlockSpec(a.shape, lambda: (0,) * a.ndim)

    return pl.pallas_call(
        kernel,
        out_shape=jax.ShapeDtypeStruct((B, 1), jnp.float32),
        in_specs=[_full(x_flat), _full(wih1), _full(b1), _full(w1c),
                  _full(whh2), _full(b2), _full(wfc), _full(bfc)],
        out_specs=pl.BlockSpec((B, 1), lambda: (0, 0)),
    )(x_flat, wih1, b1, w1c, whh2, b2, wfc, bfc)


# ----------------------------------------------------------------------------
# Pure-JAX f32 reference (for correctness check of kernel semantics).
# ----------------------------------------------------------------------------
def lstm_model_reference(x_btd, params):
    x = jnp.transpose(x_btd, (1, 0, 2)).astype(jnp.float32)
    for layer in params["lstm"]:
        w_ih, w_hh = layer["w_ih"], layer["w_hh"]
        b = layer["b_ih"] + layer["b_hh"]
        H = w_hh.shape[1]
        B = x.shape[1]

        def step(carry, x_t):
            h, c = carry
            g = x_t @ w_ih.T + h @ w_hh.T + b
            i = jax.nn.sigmoid(g[:, :H])
            f = jax.nn.sigmoid(g[:, H:2 * H])
            gg = jnp.tanh(g[:, 2 * H:3 * H])
            o = jax.nn.sigmoid(g[:, 3 * H:4 * H])
            c = f * c + i * gg
            h = o * jnp.tanh(c)
            return (h, c), h

        init = (jnp.zeros((B, H), jnp.float32), jnp.zeros((B, H), jnp.float32))
        _, x = jax.lax.scan(step, init, x)
    h_last = x[-1]
    return h_last @ params["fc_w"].T + params["fc_b"]


# ----------------------------------------------------------------------------
def make_params(key, input_size, hidden_size, num_layers):
    """Deterministic init mimicking PyTorch's U(-1/sqrt(H), 1/sqrt(H))."""
    stdv = 1.0 / np.sqrt(hidden_size)
    layers = []
    for layer in range(num_layers):
        d_in = input_size if layer == 0 else hidden_size
        key, k1, k2, k3, k4 = jax.random.split(key, 5)
        layers.append({
            "w_ih": jax.random.uniform(k1, (4 * hidden_size, d_in),
                                       jnp.float32, -stdv, stdv),
            "w_hh": jax.random.uniform(k2, (4 * hidden_size, hidden_size),
                                       jnp.float32, -stdv, stdv),
            "b_ih": jax.random.uniform(k3, (4 * hidden_size,),
                                       jnp.float32, -stdv, stdv),
            "b_hh": jax.random.uniform(k4, (4 * hidden_size,),
                                       jnp.float32, -stdv, stdv),
        })
    key, k1, k2 = jax.random.split(key, 3)
    fc_stdv = 1.0 / np.sqrt(hidden_size)
    return {
        "lstm": layers,
        "fc_w": jax.random.uniform(k1, (1, hidden_size), jnp.float32,
                                   -fc_stdv, fc_stdv),
        "fc_b": jax.random.uniform(k2, (1,), jnp.float32, -fc_stdv, fc_stdv),
    }


if __name__ == "__main__":
    # Small shapes implied by the module: batch=2, seq=8, input_size=16,
    # hidden_size=32 (4H = 128 = one vreg lane width), num_layers=2.
    B, T, D, H, L = 2, 8, 16, 32, 2

    key = jax.random.PRNGKey(0)
    key, kx, kp = jax.random.split(key, 3)
    x = jax.random.normal(kx, (B, T, D), jnp.float32)     # (batch, seq, feat)
    params = make_params(kp, D, H, L)

    out = lstm_model_forward(x, params)                   # (B, 1)
    out = jax.block_until_ready(out)

    ref = jax.block_until_ready(lstm_model_reference(x, params))
    # Tolerance accounts for explicit bf16 MXU operands in the kernel
    # (per perf review) vs the pure-f32 reference.
    np.testing.assert_allclose(np.asarray(out), np.asarray(ref),
                               rtol=5e-2, atol=5e-2)
    assert out.shape == (B, 1)
    print("KERNEL_OK")
</pallas_src>

<mosaic_0001>
module attributes {stable_mosaic.version = 11 : i64} {
  func.func @_fused_lstm_kernel(%arg0: memref<16x16xbf16, #tpu.memory_space<vmem>>, %arg1: memref<16x128xbf16, #tpu.memory_space<vmem>>, %arg2: memref<1x128xf32, #tpu.memory_space<vmem>>, %arg3: memref<32x256xbf16, #tpu.memory_space<vmem>>, %arg4: memref<32x128xbf16, #tpu.memory_space<vmem>>, %arg5: memref<1x128xf32, #tpu.memory_space<vmem>>, %arg6: memref<1x32xf32, #tpu.memory_space<vmem>>, %arg7: memref<1x1xf32, #tpu.memory_space<vmem>>, %arg8: memref<2x1xf32, #tpu.memory_space<vmem>>) attributes {dimension_semantics = [], scalar_prefetch = 0 : i64, scratch_operands = 0 : i64, tpu.core_type = #tpu.core_type<tc>} {
    %0 = tpu.iota {dimensions = array<i32: 1>} : vector<2x128xi32>
    %c64_i32 = arith.constant 64 : i32
    %1 = vector.broadcast %c64_i32 : i32 to vector<2x128xi32>
    %2 = arith.cmpi sge, %0, %1 : vector<2x128xi32>
    %c96_i32 = arith.constant 96 : i32
    %3 = vector.broadcast %c96_i32 : i32 to vector<2x128xi32>
    %4 = arith.cmpi slt, %0, %3 : vector<2x128xi32>
    %5 = arith.andi %2, %4 : vector<2x128xi1>
    %cst = arith.constant 1.000000e+00 : f32
    %cst_0 = arith.constant 5.000000e-01 : f32
    %6 = vector.broadcast %cst : f32 to vector<2x128xf32>
    %7 = vector.broadcast %cst_0 : f32 to vector<2x128xf32>
    %8 = arith.select %5, %6, %7 : vector<2x128xi1>, vector<2x128xf32>
    %cst_1 = arith.constant 0.000000e+00 : f32
    %cst_2 = arith.constant 5.000000e-01 : f32
    %9 = vector.broadcast %cst_1 : f32 to vector<2x128xf32>
    %10 = vector.broadcast %cst_2 : f32 to vector<2x128xf32>
    %11 = arith.select %5, %9, %10 : vector<2x128xi1>, vector<2x128xf32>
    %c0 = arith.constant 0 : index
    %c0_3 = arith.constant 0 : index
    %12 = vector.load %arg0[%c0, %c0_3] : memref<16x16xbf16, #tpu.memory_space<vmem>>, vector<16x16xbf16>
    %c0_4 = arith.constant 0 : index
    %c0_5 = arith.constant 0 : index
    %13 = vector.load %arg1[%c0_4, %c0_5] : memref<16x128xbf16, #tpu.memory_space<vmem>>, vector<16x128xbf16>
    %cst_6 = arith.constant dense<0.000000e+00> : vector<16x128xf32>
    %14 = tpu.matmul %12, %13, %cst_6 {dimension_numbers = #tpu.dot_dimension_numbers<[1], [0], [0], [1], [0, 0, 1, 1], [], []>} : vector<16x16xbf16>, vector<16x128xbf16>, vector<16x128xf32> -> vector<16x128xf32>
    %c0_7 = arith.constant 0 : index
    %c0_8 = arith.constant 0 : index
    %15 = vector.load %arg2[%c0_7, %c0_8] : memref<1x128xf32, #tpu.memory_space<vmem>>, vector<1x128xf32>
    %16 = vector.broadcast %15 : vector<1x128xf32> to vector<16x128xf32>
    %17 = arith.addf %14, %16 : vector<16x128xf32>
    %c0_9 = arith.constant 0 : index
    %c0_10 = arith.constant 0 : index
    %18 = vector.load %arg3[%c0_9, %c0_10] : memref<32x256xbf16, #tpu.memory_space<vmem>>, vector<32x256xbf16>
    %c0_11 = arith.constant 0 : index
    %c0_12 = arith.constant 0 : index
    %19 = vector.load %arg4[%c0_11, %c0_12] : memref<32x128xbf16, #tpu.memory_space<vmem>>, vector<32x128xbf16>
    %c0_13 = arith.constant 0 : index
    %c0_14 = arith.constant 0 : index
    %20 = vector.load %arg5[%c0_13, %c0_14] : memref<1x128xf32, #tpu.memory_space<vmem>>, vector<1x128xf32>
    %cst_15 = arith.constant 0.000000e+00 : f32
    %21 = vector.broadcast %cst_15 : f32 to vector<2x32xf32>
    %22 = vector.extract_strided_slice %17 {offsets = [0, 0], sizes = [2, 128], strides = [1, 1]} : vector<16x128xf32> to vector<2x128xf32>
    %23 = arith.mulf %22, %8 : vector<2x128xf32>
    %24 = math.tanh %23 : vector<2x128xf32>
    %25 = arith.mulf %24, %8 : vector<2x128xf32>
    %26 = arith.addf %25, %11 : vector<2x128xf32>
    %27 = vector.extract_strided_slice %26 {offsets = [0, 0], sizes = [2, 32], strides = [1, 1]} : vector<2x128xf32> to vector<2x32xf32>
    %28 = vector.extract_strided_slice %26 {offsets = [0, 32], sizes = [2, 32], strides = [1, 1]} : vector<2x128xf32> to vector<2x32xf32>
    %29 = vector.extract_strided_slice %26 {offsets = [0, 64], sizes = [2, 32], strides = [1, 1]} : vector<2x128xf32> to vector<2x32xf32>
    %30 = vector.extract_strided_slice %26 {offsets = [0, 96], sizes = [2, 32], strides = [1, 1]} : vector<2x128xf32> to vector<2x32xf32>
    %31 = arith.mulf %28, %21 : vector<2x32xf32>
    %32 = arith.mulf %27, %29 : vector<2x32xf32>
    %33 = arith.addf %31, %32 : vector<2x32xf32>
    %34 = math.tanh %33 : vector<2x32xf32>
    %35 = arith.mulf %30, %34 : vector<2x32xf32>
    %36 = arith.truncf %35 : vector<2x32xf32> to vector<2x32xbf16>
    %cst_16 = arith.constant dense<0.000000e+00> : vector<2x256xf32>
    %37 = tpu.matmul %36, %18, %cst_16 {dimension_numbers = #tpu.dot_dimension_numbers<[1], [0], [0], [1], [0, 0, 1, 1], [], []>} : vector<2x32xbf16>, vector<32x256xbf16>, vector<2x256xf32> -> vector<2x256xf32>
    %38 = vector.extract_strided_slice %37 {offsets = [0, 0], sizes = [2, 128], strides = [1, 1]} : vector<2x256xf32> to vector<2x128xf32>
    %39 = vector.extract_strided_slice %37 {offsets = [0, 128], sizes = [2, 128], strides = [1, 1]} : vector<2x256xf32> to vector<2x128xf32>
    %40 = vector.broadcast %20 : vector<1x128xf32> to vector<2x128xf32>
    %41 = arith.addf %39, %40 : vector<2x128xf32>
    %42 = arith.mulf %41, %8 : vector<2x128xf32>
    %43 = math.tanh %42 : vector<2x128xf32>
    %44 = arith.mulf %43, %8 : vector<2x128xf32>
    %45 = arith.addf %44, %11 : vector<2x128xf32>
    %46 = vector.extract_strided_slice %45 {offsets = [0, 0], sizes = [2, 32], strides = [1, 1]} : vector<2x128xf32> to vector<2x32xf32>
    %47 = vector.extract_strided_slice %45 {offsets = [0, 32], sizes = [2, 32], strides = [1, 1]} : vector<2x128xf32> to vector<2x32xf32>
    %48 = vector.extract_strided_slice %45 {offsets = [0, 64], sizes = [2, 32], strides = [1, 1]} : vector<2x128xf32> to vector<2x32xf32>
    %49 = vector.extract_strided_slice %45 {offsets = [0, 96], sizes = [2, 32], strides = [1, 1]} : vector<2x128xf32> to vector<2x32xf32>
    %50 = arith.mulf %47, %21 : vector<2x32xf32>
    %51 = arith.mulf %46, %48 : vector<2x32xf32>
    %52 = arith.addf %50, %51 : vector<2x32xf32>
    %53 = math.tanh %52 : vector<2x32xf32>
    %54 = arith.mulf %49, %53 : vector<2x32xf32>
    %55 = vector.extract_strided_slice %17 {offsets = [2, 0], sizes = [2, 128], strides = [1, 1]} : vector<16x128xf32> to vector<2x128xf32>
    %56 = arith.addf %55, %38 : vector<2x128xf32>
    %57 = arith.mulf %56, %8 : vector<2x128xf32>
    %58 = math.tanh %57 : vector<2x128xf32>
    %59 = arith.mulf %58, %8 : vector<2x128xf32>
    %60 = arith.addf %59, %11 : vector<2x128xf32>
    %61 = vector.extract_strided_slice %60 {offsets = [0, 0], sizes = [2, 32], strides = [1, 1]} : vector<2x128xf32> to vector<2x32xf32>
    %62 = vector.extract_strided_slice %60 {offsets = [0, 32], sizes = [2, 32], strides = [1, 1]} : vector<2x128xf32> to vector<2x32xf32>
    %63 = vector.extract_strided_slice %60 {offsets = [0, 64], sizes = [2, 32], strides = [1, 1]} : vector<2x128xf32> to vector<2x32xf32>
    %64 = vector.extract_strided_slice %60 {offsets = [0, 96], sizes = [2, 32], strides = [1, 1]} : vector<2x128xf32> to vector<2x32xf32>
    %65 = arith.mulf %62, %33 : vector<2x32xf32>
    %66 = arith.mulf %61, %63 : vector<2x32xf32>
    %67 = arith.addf %65, %66 : vector<2x32xf32>
    %68 = math.tanh %67 : vector<2x32xf32>
    %69 = arith.mulf %64, %68 : vector<2x32xf32>
    %70 = arith.truncf %69 : vector<2x32xf32> to vector<2x32xbf16>
    %cst_17 = arith.constant dense<0.000000e+00> : vector<2x256xf32>
    %71 = tpu.matmul %70, %18, %cst_17 {dimension_numbers = #tpu.dot_dimension_numbers<[1], [0], [0], [1], [0, 0, 1, 1], [], []>} : vector<2x32xbf16>, vector<32x256xbf16>, vector<2x256xf32> -> vector<2x256xf32>
    %72 = vector.extract_strided_slice %71 {offsets = [0, 0], sizes = [2, 128], strides = [1, 1]} : vector<2x256xf32> to vector<2x128xf32>
    %73 = vector.extract_strided_slice %71 {offsets = [0, 128], sizes = [2, 128], strides = [1, 1]} : vector<2x256xf32> to vector<2x128xf32>
    %74 = vector.broadcast %20 : vector<1x128xf32> to vector<2x128xf32>
    %75 = arith.addf %73, %74 : vector<2x128xf32>
    %76 = arith.truncf %54 : vector<2x32xf32> to vector<2x32xbf16>
    %cst_18 = arith.constant dense<0.000000e+00> : vector<2x128xf32>
    %77 = tpu.matmul %76, %19, %cst_18 {dimension_numbers = #tpu.dot_dimension_numbers<[1], [0], [0], [1], [0, 0, 1, 1], [], []>} : vector<2x32xbf16>, vector<32x128xbf16>, vector<2x128xf32> -> vector<2x128xf32>
    %78 = arith.addf %75, %77 : vector<2x128xf32>
    %79 = arith.mulf %78, %8 : vector<2x128xf32>
    %80 = math.tanh %79 : vector<2x128xf32>
    %81 = arith.mulf %80, %8 : vector<2x128xf32>
    %82 = arith.addf %81, %11 : vector<2x128xf32>
    %83 = vector.extract_strided_slice %82 {offsets = [0, 0], sizes = [2, 32], strides = [1, 1]} : vector<2x128xf32> to vector<2x32xf32>
    %84 = vector.extract_strided_slice %82 {offsets = [0, 32], sizes = [2, 32], strides = [1, 1]} : vector<2x128xf32> to vector<2x32xf32>
    %85 = vector.extract_strided_slice %82 {offsets = [0, 64], sizes = [2, 32], strides = [1, 1]} : vector<2x128xf32> to vector<2x32xf32>
    %86 = vector.extract_strided_slice %82 {offsets = [0, 96], sizes = [2, 32], strides = [1, 1]} : vector<2x128xf32> to vector<2x32xf32>
    %87 = arith.mulf %84, %52 : vector<2x32xf32>
    %88 = arith.mulf %83, %85 : vector<2x32xf32>
    %89 = arith.addf %87, %88 : vector<2x32xf32>
    %90 = math.tanh %89 : vector<2x32xf32>
    %91 = arith.mulf %86, %90 : vector<2x32xf32>
    %92 = vector.extract_strided_slice %17 {offsets = [4, 0], sizes = [2, 128], strides = [1, 1]} : vector<16x128xf32> to vector<2x128xf32>
    %93 = arith.addf %92, %72 : vector<2x128xf32>
    %94 = arith.mulf %93, %8 : vector<2x128xf32>
    %95 = math.tanh %94 : vector<2x128xf32>
    %96 = arith.mulf %95, %8 : vector<2x128xf32>
    %97 = arith.addf %96, %11 : vector<2x128xf32>
    %98 = vector.extract_strided_slice %97 {offsets = [0, 0], sizes = [2, 32], strides = [1, 1]} : vector<2x128xf32> to vector<2x32xf32>
    %99 = vector.extract_strided_slice %97 {offsets = [0, 32], sizes = [2, 32], strides = [1, 1]} : vector<2x128xf32> to vector<2x32xf32>
    %100 = vector.extract_strided_slice %97 {offsets = [0, 64], sizes = [2, 32], strides = [1, 1]} : vector<2x128xf32> to vector<2x32xf32>
    %101 = vector.extract_strided_slice %97 {offsets = [0, 96], sizes = [2, 32], strides = [1, 1]} : vector<2x128xf32> to vector<2x32xf32>
    %102 = arith.mulf %99, %67 : vector<2x32xf32>
    %103 = arith.mulf %98, %100 : vector<2x32xf32>
    %104 = arith.addf %102, %103 : vector<2x32xf32>
    %105 = math.tanh %104 : vector<2x32xf32>
    %106 = arith.mulf %101, %105 : vector<2x32xf32>
    %107 = arith.truncf %106 : vector<2x32xf32> to vector<2x32xbf16>
    %cst_19 = arith.constant dense<0.000000e+00> : vector<2x256xf32>
    %108 = tpu.matmul %107, %18, %cst_19 {dimension_numbers = #tpu.dot_dimension_numbers<[1], [0], [0], [1], [0, 0, 1, 1], [], []>} : vector<2x32xbf16>, vector<32x256xbf16>, vector<2x256xf32> -> vector<2x256xf32>
    %109 = vector.extract_strided_slice %108 {offsets = [0, 0], sizes = [2, 128], strides = [1, 1]} : vector<2x256xf32> to vector<2x128xf32>
    %110 = vector.extract_strided_slice %108 {offsets = [0, 128], sizes = [2, 128], strides = [1, 1]} : vector<2x256xf32> to vector<2x128xf32>
    %111 = vector.broadcast %20 : vector<1x128xf32> to vector<2x128xf32>
    %112 = arith.addf %110, %111 : vector<2x128xf32>
    %113 = arith.truncf %91 : vector<2x32xf32> to vector<2x32xbf16>
    %cst_20 = arith.constant dense<0.000000e+00> : vector<2x128xf32>
    %114 = tpu.matmul %113, %19, %cst_20 {dimension_numbers = #tpu.dot_dimension_numbers<[1], [0], [0], [1], [0, 0, 1, 1], [], []>} : vector<2x32xbf16>, vector<32x128xbf16>, vector<2x128xf32> -> vector<2x128xf32>
    %115 = arith.addf %112, %114 : vector<2x128xf32>
    %116 = arith.mulf %115, %8 : vector<2x128xf32>
    %117 = math.tanh %116 : vector<2x128xf32>
    %118 = arith.mulf %117, %8 : vector<2x128xf32>
    %119 = arith.addf %118, %11 : vector<2x128xf32>
    %120 = vector.extract_strided_slice %119 {offsets = [0, 0], sizes = [2, 32], strides = [1, 1]} : vector<2x128xf32> to vector<2x32xf32>
    %121 = vector.extract_strided_slice %119 {offsets = [0, 32], sizes = [2, 32], strides = [1, 1]} : vector<2x128xf32> to vector<2x32xf32>
    %122 = vector.extract_strided_slice %119 {offsets = [0, 64], sizes = [2, 32], strides = [1, 1]} : vector<2x128xf32> to vector<2x32xf32>
    %123 = vector.extract_strided_slice %119 {offsets = [0, 96], sizes = [2, 32], strides = [1, 1]} : vector<2x128xf32> to vector<2x32xf32>
    %124 = arith.mulf %121, %89 : vector<2x32xf32>
    %125 = arith.mulf %120, %122 : vector<2x32xf32>
    %126 = arith.addf %124, %125 : vector<2x32xf32>
    %127 = math.tanh %126 : vector<2x32xf32>
    %128 = arith.mulf %123, %127 : vector<2x32xf32>
    %129 = vector.extract_strided_slice %17 {offsets = [6, 0], sizes = [2, 128], strides = [1, 1]} : vector<16x128xf32> to vector<2x128xf32>
    %130 = arith.addf %129, %109 : vector<2x128xf32>
    %131 = arith.mulf %130, %8 : vector<2x128xf32>
    %132 = math.tanh %131 : vector<2x128xf32>
    %133 = arith.mulf %132, %8 : vector<2x128xf32>
    %134 = arith.addf %133, %11 : vector<2x128xf32>
    %135 = vector.extract_strided_slice %134 {offsets = [0, 0], sizes = [2, 32], strides = [1, 1]} : vector<2x128xf32> to vector<2x32xf32>
    %136 = vector.extract_strided_slice %134 {offsets = [0, 32], sizes = [2, 32], strides = [1, 1]} : vector<2x128xf32> to vector<2x32xf32>
    %137 = vector.extract_strided_slice %134 {offsets = [0, 64], sizes = [2, 32], strides = [1, 1]} : vector<2x128xf32> to vector<2x32xf32>
    %138 = vector.extract_strided_slice %134 {offsets = [0, 96], sizes = [2, 32], strides = [1, 1]} : vector<2x128xf32> to vector<2x32xf32>
    %139 = arith.mulf %136, %104 : vector<2x32xf32>
    %140 = arith.mulf %135, %137 : vector<2x32xf32>
    %141 = arith.addf %139, %140 : vector<2x32xf32>
    %142 = math.tanh %141 : vector<2x32xf32>
    %143 = arith.mulf %138, %142 : vector<2x32xf32>
    %144 = arith.truncf %143 : vector<2x32xf32> to vector<2x32xbf16>
    %cst_21 = arith.constant dense<0.000000e+00> : vector<2x256xf32>
    %145 = tpu.matmul %144, %18, %cst_21 {dimension_numbers = #tpu.dot_dimension_numbers<[1], [0], [0], [1], [0, 0, 1, 1], [], []>} : vector<2x32xbf16>, vector<32x256xbf16>, vector<2x256xf32> -> vector<2x256xf32>
    %146 = vector.extract_strided_slice %145 {offsets = [0, 0], sizes = [2, 128], strides = [1, 1]} : vector<2x256xf32> to vector<2x128xf32>
    %147 = vector.extract_strided_slice %145 {offsets = [0, 128], sizes = [2, 128], strides = [1, 1]} : vector<2x256xf32> to vector<2x128xf32>
    %148 = vector.broadcast %20 : vector<1x128xf32> to vector<2x128xf32>
    %149 = arith.addf %147, %148 : vector<2x128xf32>
    %150 = arith.truncf %128 : vector<2x32xf32> to vector<2x32xbf16>
    %cst_22 = arith.constant dense<0.000000e+00> : vector<2x128xf32>
    %151 = tpu.matmul %150, %19, %cst_22 {dimension_numbers = #tpu.dot_dimension_numbers<[1], [0], [0], [1], [0, 0, 1, 1], [], []>} : vector<2x32xbf16>, vector<32x128xbf16>, vector<2x128xf32> -> vector<2x128xf32>
    %152 = arith.addf %149, %151 : vector<2x128xf32>
    %153 = arith.mulf %152, %8 : vector<2x128xf32>
    %154 = math.tanh %153 : vector<2x128xf32>
    %155 = arith.mulf %154, %8 : vector<2x128xf32>
    %156 = arith.addf %155, %11 : vector<2x128xf32>
    %157 = vector.extract_strided_slice %156 {offsets = [0, 0], sizes = [2, 32], strides = [1, 1]} : vector<2x128xf32> to vector<2x32xf32>
    %158 = vector.extract_strided_slice %156 {offsets = [0, 32], sizes = [2, 32], strides = [1, 1]} : vector<2x128xf32> to vector<2x32xf32>
    %159 = vector.extract_strided_slice %156 {offsets = [0, 64], sizes = [2, 32], strides = [1, 1]} : vector<2x128xf32> to vector<2x32xf32>
    %160 = vector.extract_strided_slice %156 {offsets = [0, 96], sizes = [2, 32], strides = [1, 1]} : vector<2x128xf32> to vector<2x32xf32>
    %161 = arith.mulf %158, %126 : vector<2x32xf32>
    %162 = arith.mulf %157, %159 : vector<2x32xf32>
    %163 = arith.addf %161, %162 : vector<2x32xf32>
    %164 = math.tanh %163 : vector<2x32xf32>
    %165 = arith.mulf %160, %164 : vector<2x32xf32>
    %166 = vector.extract_strided_slice %17 {offsets = [8, 0], sizes = [2, 128], strides = [1, 1]} : vector<16x128xf32> to vector<2x128xf32>
    %167 = arith.addf %166, %146 : vector<2x128xf32>
    %168 = arith.mulf %167, %8 : vector<2x128xf32>
    %169 = math.tanh %168 : vector<2x128xf32>
    %170 = arith.mulf %169, %8 : vector<2x128xf32>
    %171 = arith.addf %170, %11 : vector<2x128xf32>
    %172 = vector.extract_strided_slice %171 {offsets = [0, 0], sizes = [2, 32], strides = [1, 1]} : vector<2x128xf32> to vector<2x32xf32>
    %173 = vector.extract_strided_slice %171 {offsets = [0, 32], sizes = [2, 32], strides = [1, 1]} : vector<2x128xf32> to vector<2x32xf32>
    %174 = vector.extract_strided_slice %171 {offsets = [0, 64], sizes = [2, 32], strides = [1, 1]} : vector<2x128xf32> to vector<2x32xf32>
    %175 = vector.extract_strided_slice %171 {offsets = [0, 96], sizes = [2, 32], strides = [1, 1]} : vector<2x128xf32> to vector<2x32xf32>
    %176 = arith.mulf %173, %141 : vector<2x32xf32>
    %177 = arith.mulf %172, %174 : vector<2x32xf32>
    %178 = arith.addf %176, %177 : vector<2x32xf32>
    %179 = math.tanh %178 : vector<2x32xf32>
    %180 = arith.mulf %175, %179 : vector<2x32xf32>
    %181 = arith.truncf %180 : vector<2x32xf32> to vector<2x32xbf16>
    %cst_23 = arith.constant dense<0.000000e+00> : vector<2x256xf32>
    %182 = tpu.matmul %181, %18, %cst_23 {dimension_numbers = #tpu.dot_dimension_numbers<[1], [0], [0], [1], [0, 0, 1, 1], [], []>} : vector<2x32xbf16>, vector<32x256xbf16>, vector<2x256xf32> -> vector<2x256xf32>
    %183 = vector.extract_strided_slice %182 {offsets = [0, 0], sizes = [2, 128], strides = [1, 1]} : vector<2x256xf32> to vector<2x128xf32>
    %184 = vector.extract_strided_slice %182 {offsets = [0, 128], sizes = [2, 128], strides = [1, 1]} : vector<2x256xf32> to vector<2x128xf32>
    %185 = vector.broadcast %20 : vector<1x128xf32> to vector<2x128xf32>
    %186 = arith.addf %184, %185 : vector<2x128xf32>
    %187 = arith.truncf %165 : vector<2x32xf32> to vector<2x32xbf16>
    %cst_24 = arith.constant dense<0.000000e+00> : vector<2x128xf32>
    %188 = tpu.matmul %187, %19, %cst_24 {dimension_numbers = #tpu.dot_dimension_numbers<[1], [0], [0], [1], [0, 0, 1, 1], [], []>} : vector<2x32xbf16>, vector<32x128xbf16>, vector<2x128xf32> -> vector<2x128xf32>
    %189 = arith.addf %186, %188 : vector<2x128xf32>
    %190 = arith.mulf %189, %8 : vector<2x128xf32>
    %191 = math.tanh %190 : vector<2x128xf32>
    %192 = arith.mulf %191, %8 : vector<2x128xf32>
    %193 = arith.addf %192, %11 : vector<2x128xf32>
    %194 = vector.extract_strided_slice %193 {offsets = [0, 0], sizes = [2, 32], strides = [1, 1]} : vector<2x128xf32> to vector<2x32xf32>
    %195 = vector.extract_strided_slice %193 {offsets = [0, 32], sizes = [2, 32], strides = [1, 1]} : vector<2x128xf32> to vector<2x32xf32>
    %196 = vector.extract_strided_slice %193 {offsets = [0, 64], sizes = [2, 32], strides = [1, 1]} : vector<2x128xf32> to vector<2x32xf32>
    %197 = vector.extract_strided_slice %193 {offsets = [0, 96], sizes = [2, 32], strides = [1, 1]} : vector<2x128xf32> to vector<2x32xf32>
    %198 = arith.mulf %195, %163 : vector<2x32xf32>
    %199 = arith.mulf %194, %196 : vector<2x32xf32>
    %200 = arith.addf %198, %199 : vector<2x32xf32>
    %201 = math.tanh %200 : vector<2x32xf32>
    %202 = arith.mulf %197, %201 : vector<2x32xf32>
    %203 = vector.extract_strided_slice %17 {offsets = [10, 0], sizes = [2, 128], strides = [1, 1]} : vector<16x128xf32> to vector<2x128xf32>
    %204 = arith.addf %203, %183 : vector<2x128xf32>
    %205 = arith.mulf %204, %8 : vector<2x128xf32>
    %206 = math.tanh %205 : vector<2x128xf32>
    %207 = arith.mulf %206, %8 : vector<2x128xf32>
    %208 = arith.addf %207, %11 : vector<2x128xf32>
    %209 = vector.extract_strided_slice %208 {offsets = [0, 0], sizes = [2, 32], strides = [1, 1]} : vector<2x128xf32> to vector<2x32xf32>
    %210 = vector.extract_strided_slice %208 {offsets = [0, 32], sizes = [2, 32], strides = [1, 1]} : vector<2x128xf32> to vector<2x32xf32>
    %211 = vector.extract_strided_slice %208 {offsets = [0, 64], sizes = [2, 32], strides = [1, 1]} : vector<2x128xf32> to vector<2x32xf32>
    %212 = vector.extract_strided_slice %208 {offsets = [0, 96], sizes = [2, 32], strides = [1, 1]} : vector<2x128xf32> to vector<2x32xf32>
    %213 = arith.mulf %210, %178 : vector<2x32xf32>
    %214 = arith.mulf %209, %211 : vector<2x32xf32>
    %215 = arith.addf %213, %214 : vector<2x32xf32>
    %216 = math.tanh %215 : vector<2x32xf32>
    %217 = arith.mulf %212, %216 : vector<2x32xf32>
    %218 = arith.truncf %217 : vector<2x32xf32> to vector<2x32xbf16>
    %cst_25 = arith.constant dense<0.000000e+00> : vector<2x256xf32>
    %219 = tpu.matmul %218, %18, %cst_25 {dimension_numbers = #tpu.dot_dimension_numbers<[1], [0], [0], [1], [0, 0, 1, 1], [], []>} : vector<2x32xbf16>, vector<32x256xbf16>, vector<2x256xf32> -> vector<2x256xf32>
    %220 = vector.extract_strided_slice %219 {offsets = [0, 0], sizes = [2, 128], strides = [1, 1]} : vector<2x256xf32> to vector<2x128xf32>
    %221 = vector.extract_strided_slice %219 {offsets = [0, 128], sizes = [2, 128], strides = [1, 1]} : vector<2x256xf32> to vector<2x128xf32>
    %222 = vector.broadcast %20 : vector<1x128xf32> to vector<2x128xf32>
    %223 = arith.addf %221, %222 : vector<2x128xf32>
    %224 = arith.truncf %202 : vector<2x32xf32> to vector<2x32xbf16>
    %cst_26 = arith.constant dense<0.000000e+00> : vector<2x128xf32>
    %225 = tpu.matmul %224, %19, %cst_26 {dimension_numbers = #tpu.dot_dimension_numbers<[1], [0], [0], [1], [0, 0, 1, 1], [], []>} : vector<2x32xbf16>, vector<32x128xbf16>, vector<2x128xf32> -> vector<2x128xf32>
    %226 = arith.addf %223, %225 : vector<2x128xf32>
    %227 = arith.mulf %226, %8 : vector<2x128xf32>
    %228 = math.tanh %227 : vector<2x128xf32>
    %229 = arith.mulf %228, %8 : vector<2x128xf32>
    %230 = arith.addf %229, %11 : vector<2x128xf32>
    %231 = vector.extract_strided_slice %230 {offsets = [0, 0], sizes = [2, 32], strides = [1, 1]} : vector<2x128xf32> to vector<2x32xf32>
    %232 = vector.extract_strided_slice %230 {offsets = [0, 32], sizes = [2, 32], strides = [1, 1]} : vector<2x128xf32> to vector<2x32xf32>
    %233 = vector.extract_strided_slice %230 {offsets = [0, 64], sizes = [2, 32], strides = [1, 1]} : vector<2x128xf32> to vector<2x32xf32>
    %234 = vector.extract_strided_slice %230 {offsets = [0, 96], sizes = [2, 32], strides = [1, 1]} : vector<2x128xf32> to vector<2x32xf32>
    %235 = arith.mulf %232, %200 : vector<2x32xf32>
    %236 = arith.mulf %231, %233 : vector<2x32xf32>
    %237 = arith.addf %235, %236 : vector<2x32xf32>
    %238 = math.tanh %237 : vector<2x32xf32>
    %239 = arith.mulf %234, %238 : vector<2x32xf32>
    %240 = vector.extract_strided_slice %17 {offsets = [12, 0], sizes = [2, 128], strides = [1, 1]} : vector<16x128xf32> to vector<2x128xf32>
    %241 = arith.addf %240, %220 : vector<2x128xf32>
    %242 = arith.mulf %241, %8 : vector<2x128xf32>
    %243 = math.tanh %242 : vector<2x128xf32>
    %244 = arith.mulf %243, %8 : vector<2x128xf32>
    %245 = arith.addf %244, %11 : vector<2x128xf32>
    %246 = vector.extract_strided_slice %245 {offsets = [0, 0], sizes = [2, 32], strides = [1, 1]} : vector<2x128xf32> to vector<2x32xf32>
    %247 = vector.extract_strided_slice %245 {offsets = [0, 32], sizes = [2, 32], strides = [1, 1]} : vector<2x128xf32> to vector<2x32xf32>
    %248 = vector.extract_strided_slice %245 {offsets = [0, 64], sizes = [2, 32], strides = [1, 1]} : vector<2x128xf32> to vector<2x32xf32>
    %249 = vector.extract_strided_slice %245 {offsets = [0, 96], sizes = [2, 32], strides = [1, 1]} : vector<2x128xf32> to vector<2x32xf32>
    %250 = arith.mulf %247, %215 : vector<2x32xf32>
    %251 = arith.mulf %246, %248 : vector<2x32xf32>
    %252 = arith.addf %250, %251 : vector<2x32xf32>
    %253 = math.tanh %252 : vector<2x32xf32>
    %254 = arith.mulf %249, %253 : vector<2x32xf32>
    %255 = arith.truncf %254 : vector<2x32xf32> to vector<2x32xbf16>
    %cst_27 = arith.constant dense<0.000000e+00> : vector<2x256xf32>
    %256 = tpu.matmul %255, %18, %cst_27 {dimension_numbers = #tpu.dot_dimension_numbers<[1], [0], [0], [1], [0, 0, 1, 1], [], []>} : vector<2x32xbf16>, vector<32x256xbf16>, vector<2x256xf32> -> vector<2x256xf32>
    %257 = vector.extract_strided_slice %256 {offsets = [0, 0], sizes = [2, 128], strides = [1, 1]} : vector<2x256xf32> to vector<2x128xf32>
    %258 = vector.extract_strided_slice %256 {offsets = [0, 128], sizes = [2, 128], strides = [1, 1]} : vector<2x256xf32> to vector<2x128xf32>
    %259 = vector.broadcast %20 : vector<1x128xf32> to vector<2x128xf32>
    %260 = arith.addf %258, %259 : vector<2x128xf32>
    %261 = arith.truncf %239 : vector<2x32xf32> to vector<2x32xbf16>
    %cst_28 = arith.constant dense<0.000000e+00> : vector<2x128xf32>
    %262 = tpu.matmul %261, %19, %cst_28 {dimension_numbers = #tpu.dot_dimension_numbers<[1], [0], [0], [1], [0, 0, 1, 1], [], []>} : vector<2x32xbf16>, vector<32x128xbf16>, vector<2x128xf32> -> vector<2x128xf32>
    %263 = arith.addf %260, %262 : vector<2x128xf32>
    %264 = arith.mulf %263, %8 : vector<2x128xf32>
    %265 = math.tanh %264 : vector<2x128xf32>
    %266 = arith.mulf %265, %8 : vector<2x128xf32>
    %267 = arith.addf %266, %11 : vector<2x128xf32>
    %268 = vector.extract_strided_slice %267 {offsets = [0, 0], sizes = [2, 32], strides = [1, 1]} : vector<2x128xf32> to vector<2x32xf32>
    %269 = vector.extract_strided_slice %267 {offsets = [0, 32], sizes = [2, 32], strides = [1, 1]} : vector<2x128xf32> to vector<2x32xf32>
    %270 = vector.extract_strided_slice %267 {offsets = [0, 64], sizes = [2, 32], strides = [1, 1]} : vector<2x128xf32> to vector<2x32xf32>
    %271 = vector.extract_strided_slice %267 {offsets = [0, 96], sizes = [2, 32], strides = [1, 1]} : vector<2x128xf32> to vector<2x32xf32>
    %272 = arith.mulf %269, %237 : vector<2x32xf32>
    %273 = arith.mulf %268, %270 : vector<2x32xf32>
    %274 = arith.addf %272, %273 : vector<2x32xf32>
    %275 = math.tanh %274 : vector<2x32xf32>
    %276 = arith.mulf %271, %275 : vector<2x32xf32>
    %277 = vector.extract_strided_slice %17 {offsets = [14, 0], sizes = [2, 128], strides = [1, 1]} : vector<16x128xf32> to vector<2x128xf32>
    %278 = arith.addf %277, %257 : vector<2x128xf32>
    %279 = arith.mulf %278, %8 : vector<2x128xf32>
    %280 = math.tanh %279 : vector<2x128xf32>
    %281 = arith.mulf %280, %8 : vector<2x128xf32>
    %282 = arith.addf %281, %11 : vector<2x128xf32>
    %283 = vector.extract_strided_slice %282 {offsets = [0, 0], sizes = [2, 32], strides = [1, 1]} : vector<2x128xf32> to vector<2x32xf32>
    %284 = vector.extract_strided_slice %282 {offsets = [0, 32], sizes = [2, 32], strides = [1, 1]} : vector<2x128xf32> to vector<2x32xf32>
    %285 = vector.extract_strided_slice %282 {offsets = [0, 64], sizes = [2, 32], strides = [1, 1]} : vector<2x128xf32> to vector<2x32xf32>
    %286 = vector.extract_strided_slice %282 {offsets = [0, 96], sizes = [2, 32], strides = [1, 1]} : vector<2x128xf32> to vector<2x32xf32>
    %287 = arith.mulf %284, %252 : vector<2x32xf32>
    %288 = arith.mulf %283, %285 : vector<2x32xf32>
    %289 = arith.addf %287, %288 : vector<2x32xf32>
    %290 = math.tanh %289 : vector<2x32xf32>
    %291 = arith.mulf %286, %290 : vector<2x32xf32>
    %292 = arith.truncf %291 : vector<2x32xf32> to vector<2x32xbf16>
    %cst_29 = arith.constant dense<0.000000e+00> : vector<2x256xf32>
    %293 = tpu.matmul %292, %18, %cst_29 {dimension_numbers = #tpu.dot_dimension_numbers<[1], [0], [0], [1], [0, 0, 1, 1], [], []>} : vector<2x32xbf16>, vector<32x256xbf16>, vector<2x256xf32> -> vector<2x256xf32>
    %294 = vector.extract_strided_slice %293 {offsets = [0, 128], sizes = [2, 128], strides = [1, 1]} : vector<2x256xf32> to vector<2x128xf32>
    %295 = vector.broadcast %20 : vector<1x128xf32> to vector<2x128xf32>
    %296 = arith.addf %294, %295 : vector<2x128xf32>
    %297 = arith.truncf %276 : vector<2x32xf32> to vector<2x32xbf16>
    %cst_30 = arith.constant dense<0.000000e+00> : vector<2x128xf32>
    %298 = tpu.matmul %297, %19, %cst_30 {dimension_numbers = #tpu.dot_dimension_numbers<[1], [0], [0], [1], [0, 0, 1, 1], [], []>} : vector<2x32xbf16>, vector<32x128xbf16>, vector<2x128xf32> -> vector<2x128xf32>
    %299 = arith.addf %296, %298 : vector<2x128xf32>
    %300 = arith.mulf %299, %8 : vector<2x128xf32>
    %301 = math.tanh %300 : vector<2x128xf32>
    %302 = arith.mulf %301, %8 : vector<2x128xf32>
    %303 = arith.addf %302, %11 : vector<2x128xf32>
    %304 = vector.extract_strided_slice %303 {offsets = [0, 0], sizes = [2, 32], strides = [1, 1]} : vector<2x128xf32> to vector<2x32xf32>
    %305 = vector.extract_strided_slice %303 {offsets = [0, 32], sizes = [2, 32], strides = [1, 1]} : vector<2x128xf32> to vector<2x32xf32>
    %306 = vector.extract_strided_slice %303 {offsets = [0, 64], sizes = [2, 32], strides = [1, 1]} : vector<2x128xf32> to vector<2x32xf32>
    %307 = vector.extract_strided_slice %303 {offsets = [0, 96], sizes = [2, 32], strides = [1, 1]} : vector<2x128xf32> to vector<2x32xf32>
    %308 = arith.mulf %305, %274 : vector<2x32xf32>
    %309 = arith.mulf %304, %306 : vector<2x32xf32>
    %310 = arith.addf %308, %309 : vector<2x32xf32>
    %311 = math.tanh %310 : vector<2x32xf32>
    %312 = arith.mulf %307, %311 : vector<2x32xf32>
    %c0_31 = arith.constant 0 : index
    %c0_32 = arith.constant 0 : index
    %313 = vector.load %arg6[%c0_31, %c0_32] : memref<1x32xf32, #tpu.memory_space<vmem>>, vector<1x32xf32>
    %314 = vector.broadcast %313 : vector<1x32xf32> to vector<2x32xf32>
    %315 = arith.mulf %312, %314 : vector<2x32xf32>
    %cst_33 = arith.constant dense<0.000000e+00> : vector<2xf32>
    %316 = vector.multi_reduction <add>, %315, %cst_33 [1] : vector<2x32xf32> to vector<2xf32>
    %317 = vector.shape_cast %316 : vector<2xf32> to vector<2x1xf32>
    %c0_34 = arith.constant 0 : index
    %c0_35 = arith.constant 0 : index
    %318 = vector.load %arg7[%c0_34, %c0_35] : memref<1x1xf32, #tpu.memory_space<vmem>>, vector<1x1xf32>
    %319 = vector.broadcast %318 : vector<1x1xf32> to vector<2x1xf32>
    %320 = arith.addf %317, %319 : vector<2x1xf32>
    %c0_36 = arith.constant 0 : index
    %c0_37 = arith.constant 0 : index
    %321 = vector.load %arg8[%c0_36, %c0_37] : memref<2x1xf32, #tpu.memory_space<vmem>>, vector<2x1xf32>
    tpu.vector_store %arg8[%c0_36, %c0_37], %320 {strides = array<i32>} : memref<2x1xf32, #tpu.memory_space<vmem>>, vector<2x1xf32>,
    return
  }
}

</mosaic_0001>

<bundles_post_ra>
// kernel: tpu_custom_call.1
= control target key start
LH: loop header
LB: loop body
LE: loop exit
PB: predicated region body
PF: predicated region fallthrough
CT: control target
= control target key end

     0   :  { %s2031_s0 = inlined_call_operand.hbm [shape: bf16[16,16], index: 0, kind: input, shape index: {}]   ;;  %s2032_s1 = inlined_call_operand.hbm [shape: bf16[16,128], index: 1, kind: input, shape index: {}]   ;;  %s2033_s2 = inlined_call_operand.vmem [shape: f32[1,128], index: 2, kind: input, shape index: {}]   ;;  %s2034_s3 = inlined_call_operand.hbm [shape: bf16[32,256], index: 3, kind: input, shape index: {}]   ;;  %s2035_s4 = inlined_call_operand.hbm [shape: bf16[32,128], index: 4, kind: input, shape index: {}]   ;;  %s2036_s5 = inlined_call_operand.vmem [shape: f32[1,128], index: 5, kind: input, shape index: {}]   ;;  %s2037_s6 = inlined_call_operand.vmem [shape: f32[1,32], index: 6, kind: input, shape index: {}]   ;;  %s2038_s7 = inlined_call_operand.<no memory space> [shape: f32[1,1], index: 7, kind: input, shape index: {}]   ;;  %s2039_s8 = inlined_call_operand.vmem [shape: f32[2,1], index: 8, kind: output, shape index: {}]  }
   0x1   :  { %v13_v0 = vstv %s2038_s7 }
   0x2   :  { %14 = vst [vmem:[#allocation2] sm:$0x1] %v13_v0 }
   0x3   :  { %15 = vsyncpa [#allocation4], 0 }
   0x4   :  { %16 = vsyncpa [#allocation6], 0 }
   0x5   :  { %17 = vsyncpa [#allocation9], 0  ;;  %s1646_s29 = smov [#allocation5]   ;;  %s1647_s9 = smov [#allocation3]  }
   0x6   :  { %s35_s30 = sshll.u32 %s1646_s29, 4  ;;  %s23_s10 = sshll.u32 %s1647_s9, 4  ;;  %s36_s30 = int_to_ptr.vmem [resolvable:$true] %s35_s30  ;;  %s24_s10 = int_to_ptr.vmem [resolvable:$true] %s23_s10 }
   0x7   :  { %s1568_s11 = scalar_lea.vmem %s36_s30, 128  ;;  %p1573_p1 = scmp.lt.s32.totalorder %s36_s30, %s36_s30 }
   0x8   :  { %p1569_p0 = scmp.ne.s32.totalorder %s36_s30, %s1568_s11  ;;  %p1574_p2 = scmp.lt.s32.totalorder %s1568_s11, %s1568_s11 }
   0xa   :  { %p1575_p3 = por %p1574_p2, %p1573_p1 }
   0xc   :  { %p1576_p4 = pnand %p1575_p3, %p1569_p0 }
   0xe   :  { %1579 = shalt.err (!%p1576_p4)
}
   0xf   :  { %s1648_s12 = smov 64   ;;  %s1649_s13 = smov 4  }
  0x10   :  { %41 = dma.hbm_to_vmem [thread:$0]  %s2032_s1, 128, %s36_s30, [#allocation6], %s1648_s12, %s1648_s12, %s1649_s13  }
  0x11   :  { %s1588_s15 = scalar_lea.vmem %s24_s10, 128  ;;  %p1593_p6 = scmp.lt.s32.totalorder %s24_s10, %s24_s10 }
  0x12   :  { %p1589_p5 = scmp.ne.s32.totalorder %s24_s10, %s1588_s15  ;;  %p1594_p7 = scmp.lt.s32.totalorder %s1588_s15, %s1588_s15 }
  0x14   :  { %p1595_p8 = por %p1594_p7, %p1593_p6 }
  0x16   :  { %p1596_p9 = pnand %p1595_p8, %p1589_p5 }
  0x18   :  { %1599 = shalt.err (!%p1596_p9)
}
  0x19   :  { %29 = dma.hbm_to_vmem [thread:$0]  %s2031_s0, 128, %s24_s10, [#allocation4], %s1648_s12, %s1648_s12, %s1649_s13  }
  0x1a   :  { %s1650_s18 = smov [#allocation7]  }
  0x1b   :  { %s49_s19 = sshll.u32 %s1650_s18, 4  ;;  %s50_s19 = int_to_ptr.vmem [resolvable:$true] %s49_s19 }
  0x1c   :  { %s1608_s20 = scalar_lea.vmem %s50_s19, 512  ;;  %p1613_p11 = scmp.lt.s32.totalorder %s50_s19, %s50_s19 }
  0x1d   :  { %p1609_p10 = scmp.ne.s32.totalorder %s50_s19, %s1608_s20  ;;  %p1614_p12 = scmp.lt.s32.totalorder %s1608_s20, %s1608_s20 }
  0x1f   :  { %p1615_p13 = por %p1614_p12, %p1613_p11 }
  0x21   :  { %p1616_p0 = pnand %p1615_p13, %p1609_p10 }
  0x23   :  { %1619 = shalt.err (!%p1616_p0)
}
  0x24   :  { %s1651_s1 = smov 128   ;;  %s1652_s21 = smov 8  }
  0x25   :  { %55 = dma.hbm_to_vmem [thread:$0]  %s2034_s3, 512, %s50_s19, [#allocation6], %s1651_s1, %s1651_s1, %s1652_s21  }
  0x26   :  { %s1653_s24 = smov [#allocation8]  }
  0x27   :  { %s61_s25 = sshll.u32 %s1653_s24, 4  ;;  %s62_s25 = int_to_ptr.vmem [resolvable:$true] %s61_s25 }
  0x28   :  { %s1628_s0 = scalar_lea.vmem %s62_s25, 256  ;;  %p1633_p2 = scmp.lt.s32.totalorder %s62_s25, %s62_s25 }
  0x29   :  { %p1629_p1 = scmp.ne.s32.totalorder %s62_s25, %s1628_s0  ;;  %p1634_p3 = scmp.lt.s32.totalorder %s1628_s0, %s1628_s0 }
  0x2b   :  { %p1635_p4 = por %p1634_p3, %p1633_p2 }
  0x2d   :  { %p1636_p5 = pnand %p1635_p4, %p1629_p1 }
  0x2f   :  { %1639 = shalt.err (!%p1636_p5)
}
  0x30   :  { %67 = dma.hbm_to_vmem [thread:$0]  %s2035_s4, 256, %s62_s25, [#allocation9], %s1648_s12, %s1648_s12, %s1649_s13  }
  0x31   :  { %1640 = dma.done.wait [#allocation4], 128  }
  0x32   :  { %1641 = vsyncadd [#allocation4], 4294967168 }
  0x33   :  { %1642 = dma.done.wait [#allocation6], 640  }
  0x34   :  { %1643 = vsyncadd [#allocation6], 4294966656 }
  0x35   :  { %1644 = dma.done.wait [#allocation9], 256  }
  0x36   :  { %1645 = vsyncadd [#allocation9], 4294967040  ;;  %v1654_v1 = vmov 0.0   ;;  %vm1655_vm0 = vmmov 0   ;;  %v1486_v2 = vld [vmem:[#allocation5] sm:$0xff]   ;;  %v1487_v3 = vld [vmem:[#allocation3] sm:$0xff]   ;;  %v87_v4 = vlaneseq }
  0x37   :  { %1410 = vmatprep.subr.bf16.mxu0 %v1654_v1  ;;  %1412 = vmatprep.mubr.msk.bf16.mxu0 %vm1655_vm0, %v1654_v1  ;;  %vm116_vm1 = vcmask 130048   ;;  %v1359_v6 = vld [vmem:[%s2033_s2] ss:$0 sm:$0xff]  ;;  %v1656_v7 = vmov 0.5   ;;  %s1657_s2 = smov 32   ;;  %v1658_v28 = vmov 0  }
  0x38   :  { %1411 = vmatpush3.bf16.msra.mxu0 %v1486_v2  ;;  %v88_v5 = vand.u32 127, %v87_v4  ;;  %v1749_v25 = vld [vmem:[#allocation7 + $0x14] ss:$8 sps:$4 sm:$0xff]   ;;  %v1751_v26 = vld [vmem:[#allocation7 + $0x10] ss:$8 sps:$4 sm:$0xff]   ;;  %251 = vmatprep.mubr.bf16.mxu1 %v1658_v28  ;;  %vm215_vm5 = vcmask 261120  }
  0x39   :  { %v1753_v27 = vld [vmem:[#allocation7 + $0x4] ss:$8 sps:$4 sm:$0xff]   ;;  %231 = vmatprep.subr.bf16.mxu1 %v1749_v25  ;;  %v1758_v29 = vld [vmem:[#allocation7] ss:$8 sps:$4 sm:$0xff]   ;;  %336 = vmatprep.subr.bf16.mxu0 %v1749_v25  ;;  %s1659_s9 = smov 96   ;;  %vm1338_vm6 = vcmask 254976  }
  0x3a   :  { %vm89_vm2 = vcmp.ge.s32.totalorder %v88_v5, 64  ;;  %vm90_vm3 = vcmp.lt.s32.totalorder %v88_v5, 96  ;;  %232 = vmatpush1.bf16.msra.mxu1 %v1751_v26  ;;  %v1777_v36 = vld [vmem:[%s2036_s5] ss:$0 sm:$0xff]  ;;  %v1800_v63 = vld [vmem:[#allocation8] sm:$0xff]   ;;  %vm1350_vm7 = vcmask 1024  }
  0x3b   :  { %1413 = vmatmul.mubr.msk.bf16.vlgmr.msra.gmra.mxu0 %vm116_vm1, %v1487_v3  ;;  %vm91_vm4 = vmand %vm89_vm2, %vm90_vm3  ;;  %233 = vmatprep.subr.bf16.mxu1 %v1753_v27  ;;  %v1797_v62 = vld [vmem:[#allocation8 + $0x8] sm:$0xff]  }
  0x3c   :  { %v1735_v8 = vsel %vm91_vm4, 1.0, %v1656_v7  ;;  %v1743_v17 = vsel %vm91_vm4, 0.0, %v1656_v7  ;;  %337 = vmatpush1.bf16.msra.mxu0 %v1751_v26  ;;  %356 = vmatprep.mubr.bf16.mxu0 %v1658_v28 }
  0x3d   :  { %338 = vmatprep.subr.bf16.mxu0 %v1753_v27 }
  0x3e   :  { %234 = vmatpush1.bf16.msra.mxu1 %v1758_v29 }
  0x3f   :  { %1416 = vmatprep.subr.bf16.mxu1 %v1654_v1 }
  0x40   :  { %339 = vmatpush1.bf16.msra.mxu0 %v1758_v29 }
  0x41   :  { %495 = vmatprep.subr.bf16.mxu0 %v1749_v25 }
  0xfb   :  { %v154_v9 = vpop.f32.mrf.mxu0 }
  0xfc   :  { %v1737_v10 = vadd.f32 %v1359_v6, %v154_v9 }
  0xfd   :  { %v1414_v11 = vpop.f32.mrf.mxu0 }
  0xfe   :  { %v170_v12 = vmul.f32 %v1737_v10, %v1735_v8 }
  0xff   :  { %v157_v13 = vpop.f32.mrf.mxu0 }
 0x100   :  { %1496 = vtanh.f32 %v170_v12  ;;  %v1741_v14 = vadd.f32 %v1359_v6, %v157_v13 }
 0x101   :  { %v1415_v15 = vpop.f32.mrf.mxu0 }
 0x10d   :  { %v1497_v16 = vpop.eup %1496 }
 0x10e   :  { %v172_v18 = vmul.f32 %v1497_v16, %v1735_v8 }
 0x110   :  { %v173_v19 = vadd.f32 %v172_v18, %v1743_v17 }
 0x112   :  { %176 = vrot.lane.b32.xlu0 %v173_v19, %s1648_s12  ;;  %v174_v22 = vmul.f32 0.0, %v173_v19 }
 0x184   :  { %v177_v20 = vpop.permute.xlu0 %176 }
 0x185   :  { %v179_v21 = vmul.f32 %v177_v20, %v173_v19 }
 0x187   :  { %181 = vrot.lane.b32.xlu0 %v179_v21, %s1657_s2 }
 0x1f9   :  { %v182_v23 = vpop.permute.xlu0 %181 }
 0x1fa   :  { %v184_v24 = vadd.f32 %v182_v23, %v174_v22 }
 0x1fc   :  { %1498 = vtanh.f32 %v184_v24  ;;  %v297_v55 = vrot.slane %v184_v24, 6 }
 0x209   :  { %v1499_v30 = vpop.eup %1498 }
 0x20a   :  { %187 = vrot.lane.b32.xlu1 %v1499_v30, %s1648_s12 }
 0x27c   :  { %v188_v31 = vpop.permute.xlu1 %187 }
 0x27d   :  { %v190_v32 = vmul.f32 %v188_v31, %v173_v19 }
 0x27f   :  { %v191_v33 = vpack.c.bf16 %v190_v32, %v190_v32 }
 0x281   :  { %193 = vrot.lane.b32.xlu1 %v191_v33, %s1657_s2 }
 0x2f3   :  { %v194_v34 = vpop.permute.xlu1 %193 }
 0x2f4   :  { %1367 = vmatmul.mubr.msk.bf16.vlgmr.msra.gmra.mxu1 %vm215_vm5, %v194_v34 }
 0x2f5   :  { %1420 = vmatprep.mubr.msk.bf16.mxu1 %vm1655_vm0, %v1654_v1  ;;  %1417 = vmatpush3.bf16.msra.mxu1 %v1797_v62 }
 0x2f6   :  { %1418 = vmatprep.subr.bf16.mxu1 %v1654_v1 }
 0x2f9   :  { %1419 = vmatpush3.bf16.msra.mxu1 %v1800_v63 }
 0x2fa   :  { %1424 = vmatprep.subr.bf16.mxu1 %v1654_v1 }
 0x3b4   :  { %v253_v35 = vpop.f32.mrf.mxu1 }
 0x3b5   :  { %v289_v37 = vrot.slane %v253_v35, 6 }
 0x3b6   :  { %v255_v38 = vpop.f32.mrf.mxu1 }
 0x3b7   :  { %v291_v39 = vadd.f32 %v289_v37, %v1737_v10  ;;  %v266_v40 = vadd.f32 %v1777_v36, %v255_v38 }
 0x3b8   :  { %v257_v41 = vpop.f32.mrf.mxu1 }
 0x3b9   :  { %v292_v42 = vmul.f32 %v291_v39, %v1735_v8  ;;  %v267_v43 = vmul.f32 %v266_v40, %v1735_v8 }
 0x3ba   :  { %v258_v44 = vpop.f32.mrf.mxu1 }
 0x3bb   :  { %1500 = vtanh.f32 %v292_v42 }
 0x3bc   :  { %1502 = vtanh.f32 %v267_v43 }
 0x3c8   :  { %v1501_v45 = vpop.eup %1500 }
 0x3c9   :  { %v1503_v46 = vpop.eup %1502  ;;  %v294_v47 = vmul.f32 %v1501_v45, %v1735_v8 }
 0x3ca   :  { %v269_v48 = vmul.f32 %v1503_v46, %v1735_v8 }
 0x3cb   :  { %v295_v49 = vadd.f32 %v294_v47, %v1743_v17 }
 0x3cc   :  { %v270_v50 = vadd.f32 %v269_v48, %v1743_v17 }
 0x3cd   :  { %301 = vrot.lane.b32.xlu0 %v295_v49, %s1648_s12  ;;  %v299_v56 = vmul.f32 %v297_v55, %v295_v49 }
 0x3ce   :  { %273 = vrot.lane.b32.xlu1 %v270_v50, %s1648_s12  ;;  %v271_v58 = vmul.f32 0.0, %v270_v50 }
 0x43f   :  { %v302_v51 = vpop.permute.xlu0 %301 }
 0x440   :  { %v304_v52 = vmul.f32 %v302_v51, %v295_v49  ;;  %v274_v53 = vpop.permute.xlu1 %273 }
 0x441   :  { %v276_v54 = vmul.f32 %v274_v53, %v270_v50 }
 0x442   :  { %306 = vrot.lane.b32.xlu0 %v304_v52, %s1657_s2 }
 0x443   :  { %278 = vrot.lane.b32.xlu1 %v276_v54, %s1657_s2 }
 0x4b4   :  { %v307_v57 = vpop.permute.xlu0 %306 }
 0x4b5   :  { %v1791_v59 = vadd.f32 %v307_v57, %v299_v56  ;;  %v279_v60 = vpop.permute.xlu1 %278 }
 0x4b6   :  { %v1793_v61 = vadd.f32 %v279_v60, %v271_v58 }
 0x4b7   :  { %1504 = vtanh.f32 %v1791_v59  ;;  %v456_v46 = vrot.slane %v1791_v59, 6 }
 0x4b8   :  { %1506 = vtanh.f32 %v1793_v61 }
 0x4c4   :  { %v1505_v0 = vpop.eup %1504 }
 0x4c5   :  { %v1507_v2 = vpop.eup %1506  ;;  %312 = vrot.lane.b32.xlu0 %v1505_v0, %s1648_s12 }
 0x4c6   :  { %284 = vrot.lane.b32.xlu1 %v1507_v2, %s1648_s12 }
 0x537   :  { %v313_v3 = vpop.permute.xlu0 %312 }
 0x538   :  { %v315_v4 = vmul.f32 %v313_v3, %v295_v49  ;;  %v285_v5 = vpop.permute.xlu1 %284 }
 0x539   :  { %v287_v6 = vmul.f32 %v285_v5, %v270_v50 }
 0x53a   :  { %v316_v7 = vpack.c.bf16 %v315_v4, %v315_v4 }
 0x53b   :  { %v366_v9 = vpack.c.bf16 %v287_v6, %v287_v6 }
 0x53c   :  { %v318_v11 = vrot.slane %v316_v7, 1 }
 0x53d   :  { %368 = vrot.lane.b32.xlu1 %v366_v9, %s1657_s2 }
 0x53e   :  { %319 = vrot.lane.b32.xlu0 %v318_v11, %s1657_s2 }
 0x5af   :  { %v369_v12 = vpop.permute.xlu1 %368 }
 0x5b0   :  { %1421 = vmatmul.mubr.msk.bf16.vlgmr.msra.gmra.mxu1 %vm215_vm5, %v369_v12  ;;  %v320_v13 = vpop.permute.xlu0 %319 }
 0x5b1   :  { %1369 = vmatmul.mubr.msk.bf16.vlgmr.msra.gmra.mxu0 %vm215_vm5, %v320_v13  ;;  %1425 = vmatpush3.bf16.msra.mxu1 %v1797_v62 }
 0x5b2   :  { %496 = vmatpush1.bf16.msra.mxu0 %v1751_v26  ;;  %1426 = vmatprep.subr.bf16.mxu1 %v1654_v1 }
 0x5b3   :  { %497 = vmatprep.subr.bf16.mxu0 %v1753_v27  ;;  %515 = vmatprep.mubr.bf16.mxu0 %v1658_v28 }
 0x5b4   :  { %1428 = vmatprep.mubr.msk.bf16.mxu1 %vm1655_vm0, %v1654_v1 }
 0x5b5   :  { %1427 = vmatpush3.bf16.msra.mxu1 %v1800_v63 }
 0x5b6   :  { %498 = vmatpush1.bf16.msra.mxu0 %v1758_v29  ;;  %1432 = vmatprep.subr.bf16.mxu1 %v1654_v1 }
 0x5b7   :  { %642 = vmatprep.subr.bf16.mxu0 %v1749_v25 }
 0x670   :  { %v419_v15 = vpop.f32.mrf.mxu1 }
 0x671   :  { %v358_v16 = vpop.f32.mrf.mxu0 }
 0x672   :  { %v448_v18 = vrot.slane %v358_v16, 4  ;;  %v1422_v19 = vpop.f32.mrf.mxu1 }
 0x673   :  { %v360_v20 = vpop.f32.mrf.mxu0 }
 0x674   :  { %v450_v21 = vadd.f32 %v448_v18, %v1737_v10  ;;  %v365_v22 = vadd.f32 %v1777_v36, %v360_v20  ;;  %v422_v23 = vpop.f32.mrf.mxu1 }
 0x675   :  { %v362_v24 = vpop.f32.mrf.mxu0 }
 0x676   :  { %v451_v30 = vmul.f32 %v450_v21, %v1735_v8  ;;  %v425_v31 = vadd.f32 %v419_v15, %v365_v22  ;;  %v1423_v32 = vpop.f32.mrf.mxu1 }
 0x677   :  { %v363_v33 = vpop.f32.mrf.mxu0 }
 0x678   :  { %1508 = vtanh.f32 %v451_v30  ;;  %v426_v34 = vmul.f32 %v425_v31, %v1735_v8 }
 0x67a   :  { %1510 = vtanh.f32 %v426_v34 }
 0x685   :  { %v1509_v35 = vpop.eup %1508 }
 0x686   :  { %v453_v37 = vmul.f32 %v1509_v35, %v1735_v8 }
 0x687   :  { %v1511_v38 = vpop.eup %1510 }
 0x688   :  { %v454_v39 = vadd.f32 %v453_v37, %v1743_v17  ;;  %v428_v40 = vmul.f32 %v1511_v38, %v1735_v8 }
 0x68a   :  { %460 = vrot.lane.b32.xlu0 %v454_v39, %s1648_s12  ;;  %v429_v41 = vadd.f32 %v428_v40, %v1743_v17  ;;  %v458_v47 = vmul.f32 %v456_v46, %v454_v39 }
 0x68c   :  { %432 = vrot.lane.b32.xlu1 %v429_v41, %s1648_s12  ;;  %v430_v50 = vmul.f32 %v429_v41, %v1793_v61 }
 0x6fc   :  { %v461_v42 = vpop.permute.xlu0 %460 }
 0x6fd   :  { %v463_v43 = vmul.f32 %v461_v42, %v454_v39 }
 0x6fe   :  { %v433_v44 = vpop.permute.xlu1 %432 }
 0x6ff   :  { %v435_v45 = vmul.f32 %v433_v44, %v429_v41  ;;  %465 = vrot.lane.b32.xlu0 %v463_v43, %s1657_s2 }
 0x701   :  { %437 = vrot.lane.b32.xlu1 %v435_v45, %s1657_s2 }
 0x771   :  { %v466_v48 = vpop.permute.xlu0 %465 }
 0x772   :  { %v1835_v49 = vadd.f32 %v466_v48, %v458_v47 }
 0x773   :  { %v438_v51 = vpop.permute.xlu1 %437 }
 0x774   :  { %1512 = vtanh.f32 %v1835_v49  ;;  %v1839_v52 = vadd.f32 %v438_v51, %v430_v50  ;;  %v603_v35 = vrot.slane %v1835_v49, 6 }
 0x776   :  { %1514 = vtanh.f32 %v1839_v52 }
 0x781   :  { %v1513_v53 = vpop.eup %1512 }
 0x782   :  { %471 = vrot.lane.b32.xlu0 %v1513_v53, %s1648_s12 }
 0x783   :  { %v1515_v54 = vpop.eup %1514 }
 0x784   :  { %443 = vrot.lane.b32.xlu1 %v1515_v54, %s1648_s12 }
 0x7f4   :  { %v472_v55 = vpop.permute.xlu0 %471 }
 0x7f5   :  { %v474_v56 = vmul.f32 %v472_v55, %v454_v39 }
 0x7f6   :  { %v444_v57 = vpop.permute.xlu1 %443 }
 0x7f7   :  { %v475_v58 = vpack.c.bf16 %v474_v56, %v474_v56  ;;  %v446_v59 = vmul.f32 %v444_v57, %v429_v41 }
 0x7f9   :  { %v477_v60 = vrot.slane %v475_v58, 2  ;;  %v525_v61 = vpack.c.bf16 %v446_v59, %v446_v59 }
 0x7fb   :  { %478 = vrot.lane.b32.xlu0 %v477_v60, %s1657_s2  ;;  %527 = vrot.lane.b32.xlu1 %v525_v61, %s1657_s2 }
 0x86d   :  { %v479_v0 = vpop.permute.xlu0 %478  ;;  %v528_v2 = vpop.permute.xlu1 %527 }
 0x86e   :  { %1373 = vmatmul.mubr.msk.bf16.vlgmr.msra.gmra.mxu0 %vm215_vm5, %v479_v0  ;;  %1429 = vmatmul.mubr.msk.bf16.vlgmr.msra.gmra.mxu1 %vm215_vm5, %v528_v2 }
 0x86f   :  { %643 = vmatpush1.bf16.msra.mxu0 %v1751_v26  ;;  %1433 = vmatpush3.bf16.msra.mxu1 %v1797_v62 }
 0x870   :  { %644 = vmatprep.subr.bf16.mxu0 %v1753_v27  ;;  %1434 = vmatprep.subr.bf16.mxu1 %v1654_v1 }
 0x871   :  { %662 = vmatprep.mubr.bf16.mxu0 %v1658_v28  ;;  %1436 = vmatprep.mubr.msk.bf16.mxu1 %vm1655_vm0, %v1654_v1 }
 0x873   :  { %645 = vmatpush1.bf16.msra.mxu0 %v1758_v29  ;;  %1435 = vmatpush3.bf16.msra.mxu1 %v1800_v63 }
 0x874   :  { %785 = vmatprep.subr.bf16.mxu0 %v1749_v25  ;;  %1440 = vmatprep.subr.bf16.mxu1 %v1654_v1 }
 0x92e   :  { %v517_v3 = vpop.f32.mrf.mxu0  ;;  %v566_v4 = vpop.f32.mrf.mxu1 }
 0x92f   :  { %v595_v5 = vrot.slane %v517_v3, 2 }
 0x930   :  { %v519_v6 = vpop.f32.mrf.mxu0  ;;  %v1430_v7 = vpop.f32.mrf.mxu1 }
 0x931   :  { %v597_v9 = vadd.f32 %v595_v5, %v1737_v10  ;;  %v524_v11 = vadd.f32 %v1777_v36, %v519_v6 }
 0x932   :  { %v521_v12 = vpop.f32.mrf.mxu0  ;;  %v569_v13 = vpop.f32.mrf.mxu1 }
 0x933   :  { %v598_v15 = vmul.f32 %v597_v9, %v1735_v8  ;;  %v572_v16 = vadd.f32 %v566_v4, %v524_v11 }
 0x934   :  { %v522_v18 = vpop.f32.mrf.mxu0  ;;  %v1431_v19 = vpop.f32.mrf.mxu1 }
 0x935   :  { %1516 = vtanh.f32 %v598_v15  ;;  %v573_v20 = vmul.f32 %v572_v16, %v1735_v8 }
 0x937   :  { %1518 = vtanh.f32 %v573_v20 }
 0x942   :  { %v1517_v21 = vpop.eup %1516 }
 0x943   :  { %v600_v22 = vmul.f32 %v1517_v21, %v1735_v8 }
 0x944   :  { %v1519_v23 = vpop.eup %1518 }
 0x945   :  { %v601_v24 = vadd.f32 %v600_v22, %v1743_v17  ;;  %v575_v10 = vmul.f32 %v1519_v23, %v1735_v8 }
 0x947   :  { %607 = vrot.lane.b32.xlu0 %v601_v24, %s1648_s12  ;;  %v576_v30 = vadd.f32 %v575_v10, %v1743_v17  ;;  %v605_v37 = vmul.f32 %v603_v35, %v601_v24 }
 0x949   :  { %579 = vrot.lane.b32.xlu1 %v576_v30, %s1648_s12  ;;  %v577_v40 = vmul.f32 %v576_v30, %v1839_v52 }
 0x9b9   :  { %v608_v31 = vpop.permute.xlu0 %607 }
 0x9ba   :  { %v610_v32 = vmul.f32 %v608_v31, %v601_v24 }
 0x9bb   :  { %v580_v33 = vpop.permute.xlu1 %579 }
 0x9bc   :  { %v582_v34 = vmul.f32 %v580_v33, %v576_v30  ;;  %612 = vrot.lane.b32.xlu0 %v610_v32, %s1657_s2 }
 0x9be   :  { %584 = vrot.lane.b32.xlu1 %v582_v34, %s1657_s2 }
 0xa2e   :  { %v613_v38 = vpop.permute.xlu0 %612 }
 0xa2f   :  { %v1872_v39 = vadd.f32 %v613_v38, %v605_v37 }
 0xa30   :  { %v585_v41 = vpop.permute.xlu1 %584 }
 0xa31   :  { %1520 = vtanh.f32 %v1872_v39  ;;  %v1876_v42 = vadd.f32 %v585_v41, %v577_v40  ;;  %v747_v20 = vrot.slane %v1872_v39, 6 }
 0xa33   :  { %1522 = vtanh.f32 %v1876_v42 }
 0xa3e   :  { %v1521_v43 = vpop.eup %1520 }
 0xa3f   :  { %618 = vrot.lane.b32.xlu0 %v1521_v43, %s1648_s12 }
 0xa40   :  { %v1523_v44 = vpop.eup %1522 }
 0xa41   :  { %590 = vrot.lane.b32.xlu1 %v1523_v44, %s1648_s12 }
 0xab1   :  { %v619_v45 = vpop.permute.xlu0 %618 }
 0xab2   :  { %v621_v46 = vmul.f32 %v619_v45, %v601_v24 }
 0xab3   :  { %v591_v47 = vpop.permute.xlu1 %590 }
 0xab4   :  { %v622_v48 = vpack.c.bf16 %v621_v46, %v621_v46  ;;  %v593_v49 = vmul.f32 %v591_v47, %v576_v30 }
 0xab6   :  { %v624_v50 = vrot.slane %v622_v48, 3  ;;  %v672_v51 = vpack.c.bf16 %v593_v49, %v593_v49 }
 0xab8   :  { %625 = vrot.lane.b32.xlu0 %v624_v50, %s1657_s2  ;;  %674 = vrot.lane.b32.xlu1 %v672_v51, %s1657_s2 }
 0xb2a   :  { %v626_v52 = vpop.permute.xlu0 %625  ;;  %v675_v53 = vpop.permute.xlu1 %674 }
 0xb2b   :  { %1375 = vmatmul.mubr.msk.bf16.vlgmr.msra.gmra.mxu0 %vm215_vm5, %v626_v52  ;;  %1437 = vmatmul.mubr.msk.bf16.vlgmr.msra.gmra.mxu1 %vm215_vm5, %v675_v53 }
 0xb2c   :  { %786 = vmatpush1.bf16.msra.mxu0 %v1751_v26  ;;  %1441 = vmatpush3.bf16.msra.mxu1 %v1797_v62 }
 0xb2d   :  { %787 = vmatprep.subr.bf16.mxu0 %v1753_v27  ;;  %805 = vmatprep.mubr.bf16.mxu0 %v1658_v28 }
 0xb2e   :  { %1442 = vmatprep.subr.bf16.mxu1 %v1654_v1  ;;  %1444 = vmatprep.mubr.msk.bf16.mxu1 %vm1655_vm0, %v1654_v1 }
 0xb30   :  { %788 = vmatpush1.bf16.msra.mxu0 %v1758_v29  ;;  %1443 = vmatpush3.bf16.msra.mxu1 %v1800_v63 }
 0xb31   :  { %932 = vmatprep.subr.bf16.mxu0 %v1749_v25  ;;  %1448 = vmatprep.subr.bf16.mxu1 %v1654_v1 }
 0xbeb   :  { %v664_v54 = vpop.f32.mrf.mxu0  ;;  %v713_v55 = vpop.f32.mrf.mxu1 }
 0xbec   :  { %v741_v56 = vadd.f32 %v664_v54, %v1741_v14 }
 0xbed   :  { %v666_v57 = vpop.f32.mrf.mxu0  ;;  %v1438_v58 = vpop.f32.mrf.mxu1 }
 0xbee   :  { %v742_v59 = vmul.f32 %v741_v56, %v1735_v8  ;;  %v671_v60 = vadd.f32 %v1777_v36, %v666_v57 }
 0xbef   :  { %v668_v61 = vpop.f32.mrf.mxu0  ;;  %v716_v0 = vpop.f32.mrf.mxu1 }
 0xbf0   :  { %1524 = vtanh.f32 %v742_v59  ;;  %v719_v2 = vadd.f32 %v713_v55, %v671_v60 }
 0xbf1   :  { %v669_v3 = vpop.f32.mrf.mxu0  ;;  %v1439_v4 = vpop.f32.mrf.mxu1 }
 0xbf2   :  { %v720_v5 = vmul.f32 %v719_v2, %v1735_v8 }
 0xbf4   :  { %1526 = vtanh.f32 %v720_v5 }
 0xbfd   :  { %v1525_v6 = vpop.eup %1524 }
 0xbfe   :  { %v744_v7 = vmul.f32 %v1525_v6, %v1735_v8 }
 0xc00   :  { %v745_v9 = vadd.f32 %v744_v7, %v1743_v17 }
 0xc01   :  { %v1527_v11 = vpop.eup %1526 }
 0xc02   :  { %751 = vrot.lane.b32.xlu0 %v745_v9, %s1648_s12  ;;  %v722_v12 = vmul.f32 %v1527_v11, %v1735_v8  ;;  %v749_v21 = vmul.f32 %v747_v20, %v745_v9 }
 0xc04   :  { %v723_v13 = vadd.f32 %v722_v12, %v1743_v17 }
 0xc06   :  { %726 = vrot.lane.b32.xlu1 %v723_v13, %s1648_s12  ;;  %v724_v24 = vmul.f32 %v723_v13, %v1876_v42 }
 0xc74   :  { %v752_v15 = vpop.permute.xlu0 %751 }
 0xc75   :  { %v754_v16 = vmul.f32 %v752_v15, %v745_v9 }
 0xc77   :  { %756 = vrot.lane.b32.xlu0 %v754_v16, %s1657_s2 }
 0xc78   :  { %v727_v18 = vpop.permute.xlu1 %726 }
 0xc79   :  { %v729_v19 = vmul.f32 %v727_v18, %v723_v13 }
 0xc7b   :  { %731 = vrot.lane.b32.xlu1 %v729_v19, %s1657_s2 }
 0xce9   :  { %v757_v22 = vpop.permute.xlu0 %756 }
 0xcea   :  { %v1909_v23 = vadd.f32 %v757_v22, %v749_v21 }
 0xcec   :  { %1528 = vtanh.f32 %v1909_v23  ;;  %v893_v5 = vrot.slane %v1909_v23, 6 }
 0xced   :  { %v732_v10 = vpop.permute.xlu1 %731 }
 0xcee   :  { %v734_v30 = vadd.f32 %v732_v10, %v724_v24 }
 0xcf0   :  { %1530 = vtanh.f32 %v734_v30 }
 0xcf9   :  { %v1529_v31 = vpop.eup %1528 }
 0xcfa   :  { %762 = vrot.lane.b32.xlu0 %v1529_v31, %s1648_s12 }
 0xcfd   :  { %v1531_v32 = vpop.eup %1530 }
 0xcfe   :  { %737 = vrot.lane.b32.xlu1 %v1531_v32, %s1648_s12 }
 0xd6c   :  { %v763_v33 = vpop.permute.xlu0 %762 }
 0xd6d   :  { %v765_v34 = vmul.f32 %v763_v33, %v745_v9 }
 0xd6f   :  { %v766_v35 = vpack.c.bf16 %v765_v34, %v765_v34 }
 0xd70   :  { %v738_v37 = vpop.permute.xlu1 %737 }
 0xd71   :  { %v740_v38 = vmul.f32 %v738_v37, %v723_v13  ;;  %768 = vrot.lane.b32.xlu0 %v766_v35, %s1657_s2 }
 0xd73   :  { %v815_v39 = vpack.c.bf16 %v740_v38, %v740_v38 }
 0xd75   :  { %817 = vrot.lane.b32.xlu1 %v815_v39, %s1657_s2 }
 0xde3   :  { %v769_v40 = vpop.permute.xlu0 %768 }
 0xde4   :  { %1377 = vmatmul.mubr.msk.bf16.vlgmr.msra.gmra.mxu0 %vm215_vm5, %v769_v40 }
 0xde5   :  { %933 = vmatpush1.bf16.msra.mxu0 %v1751_v26  ;;  %952 = vmatprep.mubr.bf16.mxu0 %v1658_v28 }
 0xde6   :  { %934 = vmatprep.subr.bf16.mxu0 %v1753_v27 }
 0xde7   :  { %v818_v41 = vpop.permute.xlu1 %817 }
 0xde8   :  { %1445 = vmatmul.mubr.msk.bf16.vlgmr.msra.gmra.mxu1 %vm215_vm5, %v818_v41 }
 0xde9   :  { %1449 = vmatpush3.bf16.msra.mxu1 %v1797_v62  ;;  %935 = vmatpush1.bf16.msra.mxu0 %v1758_v29 }
 0xdea   :  { %1450 = vmatprep.subr.bf16.mxu1 %v1654_v1  ;;  %1452 = vmatprep.mubr.msk.bf16.mxu1 %vm1655_vm0, %v1654_v1 }
 0xdeb   :  { %1079 = vmatprep.subr.bf16.mxu0 %v1749_v25 }
 0xded   :  { %1451 = vmatpush3.bf16.msra.mxu1 %v1800_v63 }
 0xdee   :  { %1456 = vmatprep.subr.bf16.mxu1 %v1654_v1 }
 0xea4   :  { %v807_v42 = vpop.f32.mrf.mxu0 }
 0xea5   :  { %v885_v43 = vrot.slane %v807_v42, 6 }
 0xea6   :  { %v809_v44 = vpop.f32.mrf.mxu0 }
 0xea7   :  { %v887_v45 = vadd.f32 %v885_v43, %v1741_v14  ;;  %v814_v46 = vadd.f32 %v1777_v36, %v809_v44 }
 0xea8   :  { %v811_v47 = vpop.f32.mrf.mxu0  ;;  %v856_v48 = vpop.f32.mrf.mxu1 }
 0xea9   :  { %v888_v49 = vmul.f32 %v887_v45, %v1735_v8  ;;  %v862_v50 = vadd.f32 %v856_v48, %v814_v46 }
 0xeaa   :  { %v812_v51 = vpop.f32.mrf.mxu0  ;;  %v1446_v52 = vpop.f32.mrf.mxu1 }
 0xeab   :  { %1532 = vtanh.f32 %v888_v49  ;;  %v863_v53 = vmul.f32 %v862_v50, %v1735_v8 }
 0xeac   :  { %v859_v54 = vpop.f32.mrf.mxu1 }
 0xead   :  { %1534 = vtanh.f32 %v863_v53 }
 0xeae   :  { %v1447_v55 = vpop.f32.mrf.mxu1 }
 0xeb8   :  { %v1533_v56 = vpop.eup %1532 }
 0xeb9   :  { %v890_v57 = vmul.f32 %v1533_v56, %v1735_v8 }
 0xeba   :  { %v1535_v58 = vpop.eup %1534 }
 0xebb   :  { %v891_v59 = vadd.f32 %v890_v57, %v1743_v17  ;;  %v865_v60 = vmul.f32 %v1535_v58, %v1735_v8 }
 0xebd   :  { %897 = vrot.lane.b32.xlu0 %v891_v59, %s1648_s12  ;;  %v866_v61 = vadd.f32 %v865_v60, %v1743_v17  ;;  %v895_v6 = vmul.f32 %v893_v5, %v891_v59 }
 0xebf   :  { %869 = vrot.lane.b32.xlu1 %v866_v61, %s1648_s12  ;;  %v867_v11 = vmul.f32 %v866_v61, %v734_v30 }
 0xf2f   :  { %v898_v0 = vpop.permute.xlu0 %897 }
 0xf30   :  { %v900_v2 = vmul.f32 %v898_v0, %v891_v59 }
 0xf31   :  { %v870_v3 = vpop.permute.xlu1 %869 }
 0xf32   :  { %v872_v4 = vmul.f32 %v870_v3, %v866_v61  ;;  %902 = vrot.lane.b32.xlu0 %v900_v2, %s1657_s2 }
 0xf34   :  { %874 = vrot.lane.b32.xlu1 %v872_v4, %s1657_s2 }
 0xfa4   :  { %v903_v7 = vpop.permute.xlu0 %902 }
 0xfa5   :  { %v1943_v9 = vadd.f32 %v903_v7, %v895_v6 }
 0xfa6   :  { %v875_v12 = vpop.permute.xlu1 %874 }
 0xfa7   :  { %1536 = vtanh.f32 %v1943_v9  ;;  %v1946_v13 = vadd.f32 %v875_v12, %v867_v11  ;;  %v1040_v55 = vrot.slane %v1943_v9, 6 }
 0xfa9   :  { %1538 = vtanh.f32 %v1946_v13 }
 0xfb4   :  { %v1537_v15 = vpop.eup %1536 }
 0xfb5   :  { %908 = vrot.lane.b32.xlu0 %v1537_v15, %s1648_s12 }
 0xfb6   :  { %v1539_v16 = vpop.eup %1538 }
 0xfb7   :  { %880 = vrot.lane.b32.xlu1 %v1539_v16, %s1648_s12 }
0x1027   :  { %v909_v18 = vpop.permute.xlu0 %908 }
0x1028   :  { %v911_v19 = vmul.f32 %v909_v18, %v891_v59 }
0x1029   :  { %v881_v20 = vpop.permute.xlu1 %880 }
0x102a   :  { %v912_v21 = vpack.c.bf16 %v911_v19, %v911_v19  ;;  %v883_v22 = vmul.f32 %v881_v20, %v866_v61 }
0x102c   :  { %v914_v23 = vrot.slane %v912_v21, 1  ;;  %v962_v24 = vpack.c.bf16 %v883_v22, %v883_v22 }
0x102e   :  { %915 = vrot.lane.b32.xlu0 %v914_v23, %s1657_s2  ;;  %964 = vrot.lane.b32.xlu1 %v962_v24, %s1657_s2 }
0x10a0   :  { %v916_v10 = vpop.permute.xlu0 %915  ;;  %v965_v30 = vpop.permute.xlu1 %964 }
0x10a1   :  { %1379 = vmatmul.mubr.msk.bf16.vlgmr.msra.gmra.mxu0 %vm215_vm5, %v916_v10  ;;  %1453 = vmatmul.mubr.msk.bf16.vlgmr.msra.gmra.mxu1 %vm215_vm5, %v965_v30 }
0x10a2   :  { %1080 = vmatpush1.bf16.msra.mxu0 %v1751_v26  ;;  %1457 = vmatpush3.bf16.msra.mxu1 %v1797_v62 }
0x10a3   :  { %1081 = vmatprep.subr.bf16.mxu0 %v1753_v27  ;;  %1458 = vmatprep.subr.bf16.mxu1 %v1654_v1 }
0x10a4   :  { %1099 = vmatprep.mubr.bf16.mxu0 %v1658_v28  ;;  %1460 = vmatprep.mubr.msk.bf16.mxu1 %vm1655_vm0, %v1654_v1 }
0x10a6   :  { %1082 = vmatpush1.bf16.msra.mxu0 %v1758_v29  ;;  %1459 = vmatpush3.bf16.msra.mxu1 %v1800_v63 }
0x10a7   :  { %1226 = vmatprep.subr.bf16.mxu0 %v1749_v25  ;;  %1464 = vmatprep.subr.bf16.mxu1 %v1654_v1 }
0x1161   :  { %v954_v31 = vpop.f32.mrf.mxu0  ;;  %v1003_v32 = vpop.f32.mrf.mxu1 }
0x1162   :  { %v1032_v33 = vrot.slane %v954_v31, 4 }
0x1163   :  { %v956_v34 = vpop.f32.mrf.mxu0  ;;  %v1454_v35 = vpop.f32.mrf.mxu1 }
0x1164   :  { %v1034_v37 = vadd.f32 %v1032_v33, %v1741_v14  ;;  %v961_v38 = vadd.f32 %v1777_v36, %v956_v34 }
0x1165   :  { %v958_v39 = vpop.f32.mrf.mxu0  ;;  %v1006_v40 = vpop.f32.mrf.mxu1 }
0x1166   :  { %v1035_v41 = vmul.f32 %v1034_v37, %v1735_v8  ;;  %v1009_v42 = vadd.f32 %v1003_v32, %v961_v38 }
0x1167   :  { %v959_v43 = vpop.f32.mrf.mxu0  ;;  %v1455_v44 = vpop.f32.mrf.mxu1 }
0x1168   :  { %1540 = vtanh.f32 %v1035_v41  ;;  %v1010_v25 = vmul.f32 %v1009_v42, %v1735_v8 }
0x116a   :  { %1542 = vtanh.f32 %v1010_v25 }
0x1175   :  { %v1541_v45 = vpop.eup %1540 }
0x1176   :  { %v1037_v46 = vmul.f32 %v1541_v45, %v1735_v8 }
0x1177   :  { %v1543_v47 = vpop.eup %1542 }
0x1178   :  { %v1038_v48 = vadd.f32 %v1037_v46, %v1743_v17  ;;  %v1012_v49 = vmul.f32 %v1543_v47, %v1735_v8 }
0x117a   :  { %1044 = vrot.lane.b32.xlu0 %v1038_v48, %s1648_s12  ;;  %v1013_v50 = vadd.f32 %v1012_v49, %v1743_v17  ;;  %v1042_v56 = vmul.f32 %v1040_v55, %v1038_v48 }
0x117c   :  { %1016 = vrot.lane.b32.xlu1 %v1013_v50, %s1648_s12  ;;  %v1014_v59 = vmul.f32 %v1013_v50, %v1946_v13 }
0x11ec   :  { %v1045_v51 = vpop.permute.xlu0 %1044 }
0x11ed   :  { %v1047_v52 = vmul.f32 %v1045_v51, %v1038_v48 }
0x11ee   :  { %v1017_v53 = vpop.permute.xlu1 %1016 }
0x11ef   :  { %v1019_v54 = vmul.f32 %v1017_v53, %v1013_v50  ;;  %1049 = vrot.lane.b32.xlu0 %v1047_v52, %s1657_s2 }
0x11f1   :  { %1021 = vrot.lane.b32.xlu1 %v1019_v54, %s1657_s2 }
0x1261   :  { %v1050_v57 = vpop.permute.xlu0 %1049 }
0x1262   :  { %v1979_v58 = vadd.f32 %v1050_v57, %v1042_v56 }
0x1263   :  { %v1022_v60 = vpop.permute.xlu1 %1021 }
0x1264   :  { %1544 = vtanh.f32 %v1979_v58  ;;  %v1024_v61 = vadd.f32 %v1022_v60, %v1014_v59  ;;  %v1187_v37 = vrot.slane %v1979_v58, 6 }
0x1266   :  { %1546 = vtanh.f32 %v1024_v61 }
0x1271   :  { %v1545_v0 = vpop.eup %1544 }
0x1272   :  { %1055 = vrot.lane.b32.xlu0 %v1545_v0, %s1648_s12 }
0x1273   :  { %v1547_v2 = vpop.eup %1546 }
0x1274   :  { %1027 = vrot.lane.b32.xlu1 %v1547_v2, %s1648_s12 }
0x12e4   :  { %v1056_v3 = vpop.permute.xlu0 %1055 }
0x12e5   :  { %v1058_v4 = vmul.f32 %v1056_v3, %v1038_v48 }
0x12e6   :  { %v1028_v5 = vpop.permute.xlu1 %1027 }
0x12e7   :  { %v1059_v6 = vpack.c.bf16 %v1058_v4, %v1058_v4  ;;  %v1030_v7 = vmul.f32 %v1028_v5, %v1013_v50 }
0x12e9   :  { %v1061_v9 = vrot.slane %v1059_v6, 2  ;;  %v1109_v11 = vpack.c.bf16 %v1030_v7, %v1030_v7 }
0x12eb   :  { %1062 = vrot.lane.b32.xlu0 %v1061_v9, %s1657_s2  ;;  %1111 = vrot.lane.b32.xlu1 %v1109_v11, %s1657_s2 }
0x135d   :  { %v1063_v12 = vpop.permute.xlu0 %1062  ;;  %v1112_v13 = vpop.permute.xlu1 %1111 }
0x135e   :  { %1381 = vmatmul.mubr.msk.bf16.vlgmr.msra.gmra.mxu0 %vm215_vm5, %v1063_v12  ;;  %1461 = vmatmul.mubr.msk.bf16.vlgmr.msra.gmra.mxu1 %vm215_vm5, %v1112_v13 }
0x135f   :  { %1227 = vmatpush1.bf16.msra.mxu0 %v1751_v26  ;;  %1465 = vmatpush3.bf16.msra.mxu1 %v1797_v62 }
0x1360   :  { %1228 = vmatprep.subr.bf16.mxu0 %v1753_v27  ;;  %1466 = vmatprep.subr.bf16.mxu1 %v1654_v1 }
0x1361   :  { %1246 = vmatprep.mubr.bf16.mxu0 %v1658_v28  ;;  %1468 = vmatprep.mubr.msk.bf16.mxu1 %vm1655_vm0, %v1654_v1 }
0x1363   :  { %1229 = vmatpush1.bf16.msra.mxu0 %v1758_v29  ;;  %1467 = vmatpush3.bf16.msra.mxu1 %v1800_v63 }
0x141e   :  { %v1101_v15 = vpop.f32.mrf.mxu0  ;;  %v1150_v16 = vpop.f32.mrf.mxu1 }
0x141f   :  { %v1179_v18 = vrot.slane %v1101_v15, 2 }
0x1420   :  { %v1103_v19 = vpop.f32.mrf.mxu0  ;;  %v1462_v26 = vpop.f32.mrf.mxu1 }
0x1421   :  { %v1181_v62 = vadd.f32 %v1179_v18, %v1741_v14  ;;  %v1108_v27 = vadd.f32 %v1777_v36, %v1103_v19 }
0x1422   :  { %v1105_v20 = vpop.f32.mrf.mxu0  ;;  %v1153_v21 = vpop.f32.mrf.mxu1 }
0x1423   :  { %v1182_v28 = vmul.f32 %v1181_v62, %v1735_v8  ;;  %v1156_v22 = vadd.f32 %v1150_v16, %v1108_v27  ;;  %v1386_v62 = vld [vmem:[#allocation2] ss:$0 sm:$0xff] }
0x1424   :  { %v1106_v23 = vpop.f32.mrf.mxu0  ;;  %v1463_v1 = vpop.f32.mrf.mxu1 }
0x1425   :  { %1548 = vtanh.f32 %v1182_v28  ;;  %v1157_v29 = vmul.f32 %v1156_v22, %v1735_v8 }
0x1427   :  { %1550 = vtanh.f32 %v1157_v29 }
0x1432   :  { %v1549_v63 = vpop.eup %1548 }
0x1433   :  { %v1184_v24 = vmul.f32 %v1549_v63, %v1735_v8 }
0x1434   :  { %v1551_v10 = vpop.eup %1550 }
0x1435   :  { %v1185_v30 = vadd.f32 %v1184_v24, %v1743_v17  ;;  %v1159_v14 = vmul.f32 %v1551_v10, %v1735_v8 }
0x1437   :  { %1191 = vrot.lane.b32.xlu0 %v1185_v30, %s1648_s12  ;;  %v1160_v31 = vadd.f32 %v1159_v14, %v1743_v17  ;;  %v1189_v38 = vmul.f32 %v1187_v37, %v1185_v30 }
0x1439   :  { %1163 = vrot.lane.b32.xlu1 %v1160_v31, %s1648_s12  ;;  %v1161_v41 = vmul.f32 %v1160_v31, %v1024_v61 }
0x14a9   :  { %v1192_v32 = vpop.permute.xlu0 %1191 }
0x14aa   :  { %v1194_v33 = vmul.f32 %v1192_v32, %v1185_v30 }
0x14ab   :  { %v1164_v34 = vpop.permute.xlu1 %1163 }
0x14ac   :  { %v1166_v35 = vmul.f32 %v1164_v34, %v1160_v31  ;;  %1196 = vrot.lane.b32.xlu0 %v1194_v33, %s1657_s2 }
0x14ae   :  { %1168 = vrot.lane.b32.xlu1 %v1166_v35, %s1657_s2 }
0x151e   :  { %v1197_v39 = vpop.permute.xlu0 %1196 }
0x151f   :  { %v1199_v40 = vadd.f32 %v1197_v39, %v1189_v38 }
0x1520   :  { %v1169_v42 = vpop.permute.xlu1 %1168 }
0x1521   :  { %1552 = vtanh.f32 %v1199_v40  ;;  %v1171_v43 = vadd.f32 %v1169_v42, %v1161_v41 }
0x1523   :  { %1554 = vtanh.f32 %v1171_v43 }
0x152e   :  { %v1553_v44 = vpop.eup %1552 }
0x152f   :  { %1202 = vrot.lane.b32.xlu0 %v1553_v44, %s1648_s12 }
0x1530   :  { %v1555_v25 = vpop.eup %1554 }
0x1531   :  { %1174 = vrot.lane.b32.xlu1 %v1555_v25, %s1648_s12 }
0x15a1   :  { %v1203_v45 = vpop.permute.xlu0 %1202 }
0x15a2   :  { %v1205_v46 = vmul.f32 %v1203_v45, %v1185_v30 }
0x15a3   :  { %v1175_v47 = vpop.permute.xlu1 %1174 }
0x15a4   :  { %v1206_v48 = vpack.c.bf16 %v1205_v46, %v1205_v46  ;;  %v1177_v49 = vmul.f32 %v1175_v47, %v1160_v31 }
0x15a6   :  { %v1208_v50 = vrot.slane %v1206_v48, 3  ;;  %v1255_v51 = vpack.c.bf16 %v1177_v49, %v1177_v49 }
0x15a8   :  { %1209 = vrot.lane.b32.xlu0 %v1208_v50, %s1657_s2  ;;  %1257 = vrot.lane.b32.xlu1 %v1255_v51, %s1657_s2 }
0x161a   :  { %v1210_v52 = vpop.permute.xlu0 %1209  ;;  %v1258_v53 = vpop.permute.xlu1 %1257 }
0x161b   :  { %1383 = vmatmul.mubr.msk.bf16.vlgmr.msra.gmra.mxu0 %vm215_vm5, %v1210_v52  ;;  %1469 = vmatmul.mubr.msk.bf16.vlgmr.msra.gmra.mxu1 %vm215_vm5, %v1258_v53 }
0x16db   :  { %v1248_v54 = vpop.f32.mrf.mxu0  ;;  %v1296_v55 = vpop.f32.mrf.mxu1 }
0x16dd   :  { %v1249_v56 = vpop.f32.mrf.mxu0  ;;  %v1470_v57 = vpop.f32.mrf.mxu1 }
0x16de   :  { %v1254_v58 = vadd.f32 %v1777_v36, %v1249_v56  ;;  %v1385_v36 = vld [vmem:[%s2037_s6] ss:$0 sm:$0xff] }
0x16df   :  { %v1251_v59 = vpop.f32.mrf.mxu0  ;;  %v1299_v60 = vpop.f32.mrf.mxu1 }
0x16e0   :  { %v1302_v61 = vadd.f32 %v1296_v55, %v1254_v58 }
0x16e1   :  { %v1252_v0 = vpop.f32.mrf.mxu0  ;;  %v1471_v2 = vpop.f32.mrf.mxu1 }
0x16e2   :  { %v1303_v3 = vmul.f32 %v1302_v61, %v1735_v8 }
0x16e4   :  { %1556 = vtanh.f32 %v1303_v3 }
0x16f1   :  { %v1557_v4 = vpop.eup %1556 }
0x16f2   :  { %v1305_v5 = vmul.f32 %v1557_v4, %v1735_v8 }
0x16f4   :  { %v1306_v6 = vadd.f32 %v1305_v5, %v1743_v17 }
0x16f6   :  { %1309 = vrot.lane.b32.xlu0 %v1306_v6, %s1648_s12  ;;  %v1307_v11 = vmul.f32 %v1306_v6, %v1171_v43 }
0x1768   :  { %v1310_v7 = vpop.permute.xlu0 %1309 }
0x1769   :  { %v1312_v9 = vmul.f32 %v1310_v7, %v1306_v6 }
0x176b   :  { %1314 = vrot.lane.b32.xlu1 %v1312_v9, %s1657_s2 }
0x176f   :  { %1330 = vrot.lane.b32.xlu1 %v1385_v36, %s1659_s9 }
0x17dd   :  { %v1315_v12 = vpop.permute.xlu1 %1314 }
0x17de   :  { %v1317_v13 = vadd.f32 %v1315_v12, %v1307_v11 }
0x17e0   :  { %1558 = vtanh.f32 %v1317_v13 }
0x17e1   :  { %v1331_v17 = vpop.permute.xlu1 %1330 }
0x17ed   :  { %v1559_v15 = vpop.eup %1558 }
0x17ee   :  { %1320 = vrot.lane.b32.xlu0 %v1559_v15, %s1648_s12 }
0x1860   :  { %v1321_v8 = vpop.permute.xlu0 %1320 }
0x1861   :  { %v1323_v16 = vmul.f32 %v1321_v8, %v1306_v6 }
0x1863   :  { %v1333_v18 = vmul.f32 %v1331_v17, %v1323_v16 }
0x1865   :  { %1335 = vrot.lane.b32.xlu0 %v1333_v18, %s1657_s2 }
0x18d7   :  { %v1336_v19 = vpop.permute.xlu0 %1335 }
0x18d8   :  { %v1339_v26 = vsel %vm1338_vm6, %v1336_v19, 0.0 }
0x18d9   :  { %1340 = vadd.xlane.f32.xlu1 %v1339_v26 }
0x1962   :  { %v1341_v27 = vpop.xlane.xlu1 %1340 }
0x1963   :  { %v1349_v20 = vadd.f32 %v1386_v62, %v1341_v27 }
0x1965   :  { %1351 = vst.msk [vmem:[%s2039_s8] sm:$0x3] %vm1350_vm7, %v1349_v20 }
0x1966   :  { %1356 = vsyncpa [#allocation4], 1 }
0x1967   :  { %1357 = vsyncpa [#allocation6], 1 }
0x1968   :  { %1358 = vsyncpa [#allocation9], 1 }

</bundles_post_ra>
